<compile_context>
chip_gen: v5e
topology: v5e:2x2
jax: 0.10.0
libtpu: 0.0.40
codegen_flags: <defaults>
</compile_context>

<pallas_src>
import functools

import jax
import jax.numpy as jnp
from jax.experimental import pallas as pl
from jax.experimental.pallas import tpu as pltpu


def _vmem_capacity_bytes():
    try:
        return pltpu.get_tpu_info().vmem_capacity_bytes
    except Exception:
        return 64 * 1024 * 1024  # conservative (v7x-sized) fallback


_VMEM_CAP = _vmem_capacity_bytes()
# Raise the scoped-VMEM limit above the 16/32 MiB defaults, with headroom.
_VMEM_LIMIT = int(min(_VMEM_CAP * 3 // 4, 96 * 1024 * 1024))
# Bigger row tiles on 128 MiB parts (v5e/v6e), smaller on 64 MiB v7x.
_MAX_ROW_TILE = 512 if _VMEM_CAP >= 100 * 1024 * 1024 else 256

_COMPILER_PARAMS = pltpu.CompilerParams(
    dimension_semantics=("parallel",),
    vmem_limit_bytes=_VMEM_LIMIT,
)


def _row_tile(n, max_tile):
    """Largest row tile that evenly divides n (multiple of 8 when tiling)."""
    if n <= max_tile:
        return n
    for t in range(max_tile, 7, -8):
        if n % t == 0:
            return t
    return n  # fallback: no tiling


# ---------------------------------------------------------------------------
# Kernel 1: head-fused projection  (lane-dense:  x @ [W_0|W_1|...],  x @ [w_src|w_dst])
# ---------------------------------------------------------------------------
def gat_project_kernel(x_ref, w_ref, wa_ref, h_ref, s_ref):
    """One grid step = one tile of node rows.

    x_ref : (TILE, f_in)      f32
    w_ref : (f_in, H*f_out)   bf16  per-head projections packed along lanes
    wa_ref: (f_in, 2*H)       bf16  folded [W_h @ a_src_h | W_h @ a_dst_h]
    h_ref : (TILE, H*f_out)   bf16  projected features (RHS of the aggregation)
    s_ref : (TILE, 2*H)       f32   per-node src/dst attention scores
    """
    xb = x_ref[...].astype(jnp.bfloat16)                      # cast only the MXU operand
    h = jnp.dot(xb, w_ref[...], preferred_element_type=jnp.float32)
    h_ref[...] = h.astype(h_ref.dtype)
    s_ref[...] = jnp.dot(xb, wa_ref[...], preferred_element_type=jnp.float32)


# ---------------------------------------------------------------------------
# Kernel 2: masked attention + aggregation, tiled over destination-node rows
# ---------------------------------------------------------------------------
def gat_attention_kernel(src_ref, dst_ref, adj_ref, h_ref, o_ref, *,
                         n_head, f_out, slope, apply_elu):
    """One grid step = one tile of destination rows, all heads.

    src_ref : (TILE_R, H)        f32   a_src-score of the destination rows
    dst_ref : (H, N)             f32   a_dst-score of every source node (row-oriented)
    adj_ref : (TILE_R, N)        bf16  0/1 adjacency mask tile
    h_ref   : (N, H*f_out)       bf16  projected features, heads on the lane axis
    o_ref   : (TILE_R, H*f_out)  f32   concatenated-head output (lane-dense store)
    """
    mask = adj_ref[...].astype(jnp.float32)          # loaded once, shared by all heads
    per_head = []
    for h in range(n_head):                          # static loop (H is tiny)
        s = src_ref[:, h:h + 1] + dst_ref[h:h + 1, :]           # (TILE_R, N)
        s = jnp.where(s > 0, s, slope * s)                      # LeakyReLU(0.2)
        e = jnp.exp(-s) * mask                                  # masked scores, f32
        # Guard against nodes with no in-edges (reference would produce NaN).
        denom = jnp.maximum(jnp.sum(e, axis=-1, keepdims=True), 1e-20)
        agg = jnp.dot(e.astype(jnp.bfloat16),                   # bf16 MXU operands
                      h_ref[:, h * f_out:(h + 1) * f_out],
                      preferred_element_type=jnp.float32)       # (TILE_R, f_out)
        per_head.append(agg * pl.reciprocal(denom, approx=True))
    out = jnp.concatenate(per_head, axis=-1)                    # (TILE_R, H*f_out)
    if apply_elu:                                               # fused inter-layer ELU
        out = jnp.where(out > 0, out, jnp.exp(jnp.minimum(out, 0.0)) - 1.0)
    o_ref[...] = out.astype(o_ref.dtype)


# ---------------------------------------------------------------------------
# Layer wrapper
# ---------------------------------------------------------------------------
def multi_head_gat_layer(x, adj_mask, w, a_src, a_dst, *, apply_elu):
    """x: (N, f_in) f32, adj_mask: (N, N) bf16 0/1, w: (H, f_in, f_out),
    a_*: (H, f_out, 1).  Returns (N, H*f_out) f32 with heads concatenated."""
    n_head, f_in, f_out = w.shape
    N = x.shape[0]
    hf = n_head * f_out
    tile = _row_tile(N, _MAX_ROW_TILE)

    # Head-fused projection weights and folded attention projections
    # (x @ W_h) @ a_h  ==  x @ (W_h @ a_h): kills the per-head width-1 matvecs.
    w_all = jnp.transpose(w, (1, 0, 2)).reshape(f_in, hf).astype(jnp.bfloat16)
    w_src = jnp.einsum("hio,hoz->ih", w, a_src)                 # (f_in, H)
    w_dst = jnp.einsum("hio,hoz->ih", w, a_dst)                 # (f_in, H)
    w_att = jnp.concatenate([w_src, w_dst], axis=-1).astype(jnp.bfloat16)

    h_all, s_all = pl.pallas_call(
        gat_project_kernel,
        out_shape=(jax.ShapeDtypeStruct((N, hf), jnp.bfloat16),
                   jax.ShapeDtypeStruct((N, 2 * n_head), jnp.float32)),
        grid=(N // tile,),
        in_specs=[
            pl.BlockSpec((tile, f_in), lambda i: (i, 0)),
            pl.BlockSpec((f_in, hf), lambda i: (0, 0)),            # resident weights
            pl.BlockSpec((f_in, 2 * n_head), lambda i: (0, 0)),
        ],
        out_specs=(
            pl.BlockSpec((tile, hf), lambda i: (i, 0)),
            pl.BlockSpec((tile, 2 * n_head), lambda i: (i, 0)),
        ),
        compiler_params=_COMPILER_PARAMS,
    )(x, w_all, w_att)

    # Tiny score rearrangement outside the kernel (N*H elements): destination
    # scores stay column-oriented, source scores are fed row-oriented so the
    # attention kernel never transposes.
    src = s_all[:, :n_head]                       # (N, H)
    dst_t = jnp.transpose(s_all[:, n_head:])      # (H, N)

    kernel = functools.partial(gat_attention_kernel, n_head=n_head, f_out=f_out,
                               slope=0.2, apply_elu=apply_elu)
    out = pl.pallas_call(
        kernel,
        out_shape=jax.ShapeDtypeStruct((N, hf), jnp.float32),
        grid=(N // tile,),
        in_specs=[
            pl.BlockSpec((tile, n_head), lambda i: (i, 0)),
            pl.BlockSpec((n_head, N), lambda i: (0, 0)),           # resident
            pl.BlockSpec((tile, N), lambda i: (i, 0)),             # streamed adjacency tile
            pl.BlockSpec((N, hf), lambda i: (0, 0)),               # resident features
        ],
        out_specs=pl.BlockSpec((tile, hf), lambda i: (i, 0)),
        compiler_params=_COMPILER_PARAMS,
    )(src, dst_t, adj_mask, h_all)
    return out


def init_gat_params(key, n_units, n_heads):
    """Deterministic per-layer params: [(w, a_src, a_dst), ...]."""
    params = []
    num_layer = len(n_units) - 1
    for i in range(num_layer):
        f_in = n_units[i] * n_heads[i - 1] if i else n_units[i]
        f_out = n_units[i + 1]
        h = n_heads[i]
        key, k1, k2, k3 = jax.random.split(key, 4)
        w = jax.random.normal(k1, (h, f_in, f_out), jnp.float32) * 0.1
        a_src = jax.random.normal(k2, (h, f_out, 1), jnp.float32) * 0.1
        a_dst = jax.random.normal(k3, (h, f_out, 1), jnp.float32) * 0.1
        params.append((w, a_src, a_dst))
    return params


def gat_forward(params, x, adj, diag=False):
    """Mirror of GAT.forward in eval mode (dropout = identity)."""
    if diag:
        raise NotImplementedError("TODO(synk): diag=True variant not implemented")
    # Adjacency is only ever used as a >0 mask: binarize once, store as bf16
    # (half the HBM bytes of f32 for the dominant N^2 operand), reuse per layer.
    adj_mask = (adj > 0).astype(jnp.bfloat16)
    num_layer = len(params)
    for i, (w, a_src, a_dst) in enumerate(params):
        x = multi_head_gat_layer(x, adj_mask, w, a_src, a_dst,
                                 apply_elu=(i + 1 < num_layer))
    # Final layer: mean over heads (heads live side-by-side on the feature axis).
    n_head, _, f_out = params[-1][0].shape
    x = x.reshape(x.shape[0], n_head, f_out).mean(axis=1)
    return x


if __name__ == "__main__":
    # GAT(n_units=[32, 64, 32], n_heads=[2, 2], dropout=0.0, attn_dropout=0.0,
    #     instance_normalization=False, diag=False), eval mode.
    n_units = [32, 64, 32]
    n_heads = [2, 2]
    N = 64

    key = jax.random.PRNGKey(0)
    kx, kadj, kp = jax.random.split(key, 3)

    x = jax.random.normal(kx, (N, n_units[0]), jnp.float32)
    # dense adjacency: random edges + self loops (guarantees nonzero row sums)
    adj = (jax.random.uniform(kadj, (N, N)) < 0.3).astype(jnp.float32)
    adj = jnp.maximum(adj, jnp.eye(N, dtype=jnp.float32))

    params = init_gat_params(kp, n_units, n_heads)

    fwd = jax.jit(gat_forward)
    out = jax.block_until_ready(fwd(params, x, adj))

    assert out.shape == (N, n_units[-1]), out.shape
    assert bool(jnp.all(jnp.isfinite(out)))
    print("KERNEL_OK")
</pallas_src>

<mosaic_0001>
module attributes {stable_mosaic.version = 11 : i64} {
  func.func @gat_project_kernel(%arg0: i32, %arg1: memref<64x32xf32, #tpu.memory_space<vmem>>, %arg2: memref<32x128xbf16, #tpu.memory_space<vmem>>, %arg3: memref<32x4xbf16, #tpu.memory_space<vmem>>, %arg4: memref<64x128xbf16, #tpu.memory_space<vmem>>, %arg5: memref<64x4xf32, #tpu.memory_space<vmem>>) attributes {dimension_semantics = [#tpu.dimension_semantics<parallel>], iteration_bounds = array<i64: 1>, scalar_prefetch = 0 : i64, scratch_operands = 0 : i64, tpu.core_type = #tpu.core_type<tc>, window_params = [{transform_indices = @transform_0, window_bounds = array<i64: 64, 32>}, {pipeline_mode = #tpu.pipeline_mode<synchronous>, transform_indices = @transform_1, window_bounds = array<i64: 32, 128>}, {pipeline_mode = #tpu.pipeline_mode<synchronous>, transform_indices = @transform_2, window_bounds = array<i64: 32, 4>}, {transform_indices = @transform_3, window_bounds = array<i64: 64, 128>}, {transform_indices = @transform_4, window_bounds = array<i64: 64, 4>}]} {
    %c0 = arith.constant 0 : index
    %c0_0 = arith.constant 0 : index
    %0 = vector.load %arg1[%c0, %c0_0] : memref<64x32xf32, #tpu.memory_space<vmem>>, vector<64x32xf32>
    %1 = arith.truncf %0 : vector<64x32xf32> to vector<64x32xbf16>
    %c0_1 = arith.constant 0 : index
    %c0_2 = arith.constant 0 : index
    %2 = vector.load %arg2[%c0_1, %c0_2] : memref<32x128xbf16, #tpu.memory_space<vmem>>, vector<32x128xbf16>
    %cst = arith.constant dense<0.000000e+00> : vector<64x128xf32>
    %3 = tpu.matmul %1, %2, %cst {dimension_numbers = #tpu.dot_dimension_numbers<[1], [0], [0], [1], [0, 0, 1, 1], [], []>} : vector<64x32xbf16>, vector<32x128xbf16>, vector<64x128xf32> -> vector<64x128xf32>
    %4 = arith.truncf %3 : vector<64x128xf32> to vector<64x128xbf16>
    %c0_3 = arith.constant 0 : index
    %c0_4 = arith.constant 0 : index
    %5 = vector.load %arg4[%c0_3, %c0_4] : memref<64x128xbf16, #tpu.memory_space<vmem>>, vector<64x128xbf16>
    tpu.vector_store %arg4[%c0_3, %c0_4], %4 {strides = array<i32>} : memref<64x128xbf16, #tpu.memory_space<vmem>>, vector<64x128xbf16>,
    %c0_5 = arith.constant 0 : index
    %c0_6 = arith.constant 0 : index
    %6 = vector.load %arg3[%c0_5, %c0_6] : memref<32x4xbf16, #tpu.memory_space<vmem>>, vector<32x4xbf16>
    %cst_7 = arith.constant dense<0.000000e+00> : vector<64x4xf32>
    %7 = tpu.matmul %1, %6, %cst_7 {dimension_numbers = #tpu.dot_dimension_numbers<[1], [0], [0], [1], [0, 0, 1, 1], [], []>} : vector<64x32xbf16>, vector<32x4xbf16>, vector<64x4xf32> -> vector<64x4xf32>
    %c0_8 = arith.constant 0 : index
    %c0_9 = arith.constant 0 : index
    %8 = vector.load %arg5[%c0_8, %c0_9] : memref<64x4xf32, #tpu.memory_space<vmem>>, vector<64x4xf32>
    tpu.vector_store %arg5[%c0_8, %c0_9], %7 {strides = array<i32>} : memref<64x4xf32, #tpu.memory_space<vmem>>, vector<64x4xf32>,
    return
  }
  func.func @transform_0(%arg0: i32) -> (i32, i32) {
    %c0_i32 = arith.constant 0 : i32
    %c0_i32_0 = arith.constant 0 : i32
    return %arg0, %c0_i32 : i32, i32
  }
  func.func @transform_1(%arg0: i32) -> (i32, i32) {
    %c0_i32 = arith.constant 0 : i32
    %c0_i32_0 = arith.constant 0 : i32
    %c0_i32_1 = arith.constant 0 : i32
    return %c0_i32, %c0_i32_0 : i32, i32
  }
  func.func @transform_2(%arg0: i32) -> (i32, i32) {
    %c0_i32 = arith.constant 0 : i32
    %c0_i32_0 = arith.constant 0 : i32
    %c0_i32_1 = arith.constant 0 : i32
    return %c0_i32, %c0_i32_0 : i32, i32
  }
  func.func @transform_3(%arg0: i32) -> (i32, i32) {
    %c0_i32 = arith.constant 0 : i32
    %c0_i32_0 = arith.constant 0 : i32
    return %arg0, %c0_i32 : i32, i32
  }
  func.func @transform_4(%arg0: i32) -> (i32, i32) {
    %c0_i32 = arith.constant 0 : i32
    %c0_i32_0 = arith.constant 0 : i32
    return %arg0, %c0_i32 : i32, i32
  }
}

module attributes {stable_mosaic.version = 11 : i64} {
  func.func @gat_attention_kernel(%arg0: i32, %arg1: memref<64x2xf32, #tpu.memory_space<vmem>>, %arg2: memref<2x64xf32, #tpu.memory_space<vmem>>, %arg3: memref<64x64xbf16, #tpu.memory_space<vmem>>, %arg4: memref<64x128xbf16, #tpu.memory_space<vmem>>, %arg5: memref<64x128xf32, #tpu.memory_space<vmem>>) attributes {dimension_semantics = [#tpu.dimension_semantics<parallel>], iteration_bounds = array<i64: 1>, scalar_prefetch = 0 : i64, scratch_operands = 0 : i64, tpu.core_type = #tpu.core_type<tc>, window_params = [{transform_indices = @transform_0, window_bounds = array<i64: 64, 2>}, {pipeline_mode = #tpu.pipeline_mode<synchronous>, transform_indices = @transform_1, window_bounds = array<i64: 2, 64>}, {transform_indices = @transform_2, window_bounds = array<i64: 64, 64>}, {pipeline_mode = #tpu.pipeline_mode<synchronous>, transform_indices = @transform_3, window_bounds = array<i64: 64, 128>}, {transform_indices = @transform_4, window_bounds = array<i64: 64, 128>}]} {
    %c0 = arith.constant 0 : index
    %c0_0 = arith.constant 0 : index
    %0 = vector.load %arg3[%c0, %c0_0] : memref<64x64xbf16, #tpu.memory_space<vmem>>, vector<64x64xbf16>
    %1 = arith.extf %0 : vector<64x64xbf16> to vector<64x64xf32>
    %c0_1 = arith.constant 0 : index
    %c0_2 = arith.constant 0 : index
    %2 = vector.load %arg1[%c0_1, %c0_2] : memref<64x2xf32, #tpu.memory_space<vmem>>, vector<64x1xf32>
    %c0_3 = arith.constant 0 : index
    %c0_4 = arith.constant 0 : index
    %3 = vector.load %arg2[%c0_3, %c0_4] : memref<2x64xf32, #tpu.memory_space<vmem>>, vector<1x64xf32>
    %4 = vector.broadcast %2 : vector<64x1xf32> to vector<64x64xf32>
    %5 = vector.broadcast %3 : vector<1x64xf32> to vector<64x64xf32>
    %6 = arith.addf %4, %5 : vector<64x64xf32>
    %cst = arith.constant 0.000000e+00 : f32
    %7 = vector.broadcast %cst : f32 to vector<64x64xf32>
    %8 = arith.cmpf ogt, %6, %7 : vector<64x64xf32>
    %cst_5 = arith.constant 2.000000e-01 : f32
    %9 = vector.broadcast %cst_5 : f32 to vector<64x64xf32>
    %10 = arith.mulf %9, %6 : vector<64x64xf32>
    %11 = arith.select %8, %6, %10 : vector<64x64xi1>, vector<64x64xf32>
    %cst_6 = arith.constant 0.000000e+00 : f32
    %12 = vector.broadcast %cst_6 : f32 to vector<64x64xf32>
    %13 = arith.subf %12, %11 : vector<64x64xf32>
    %14 = math.exp %13 : vector<64x64xf32>
    %15 = arith.mulf %14, %1 : vector<64x64xf32>
    %cst_7 = arith.constant dense<0.000000e+00> : vector<64xf32>
    %16 = vector.multi_reduction <add>, %15, %cst_7 [1] : vector<64x64xf32> to vector<64xf32>
    %17 = vector.shape_cast %16 : vector<64xf32> to vector<64x1xf32>
    %cst_8 = arith.constant 9.99999968E-21 : f32
    %18 = vector.broadcast %cst_8 : f32 to vector<64x1xf32>
    %19 = arith.maximumf %17, %18 : vector<64x1xf32>
    %20 = arith.truncf %15 : vector<64x64xf32> to vector<64x64xbf16>
    %c0_9 = arith.constant 0 : index
    %c0_10 = arith.constant 0 : index
    %21 = vector.load %arg4[%c0_9, %c0_10] : memref<64x128xbf16, #tpu.memory_space<vmem>>, vector<64x64xbf16>
    %cst_11 = arith.constant dense<0.000000e+00> : vector<64x64xf32>
    %22 = tpu.matmul %20, %21, %cst_11 {dimension_numbers = #tpu.dot_dimension_numbers<[1], [0], [0], [1], [0, 0, 1, 1], [], []>} : vector<64x64xbf16>, vector<64x64xbf16>, vector<64x64xf32> -> vector<64x64xf32>
    %23 = tpu.reciprocal %19 {approx = true} : vector<64x1xf32> -> vector<64x1xf32>
    %24 = vector.broadcast %23 : vector<64x1xf32> to vector<64x64xf32>
    %25 = arith.mulf %22, %24 : vector<64x64xf32>
    %c0_12 = arith.constant 0 : index
    %c1 = arith.constant 1 : index
    %26 = vector.load %arg1[%c0_12, %c1] : memref<64x2xf32, #tpu.memory_space<vmem>>, vector<64x1xf32>
    %c1_13 = arith.constant 1 : index
    %c0_14 = arith.constant 0 : index
    %27 = vector.load %arg2[%c1_13, %c0_14] : memref<2x64xf32, #tpu.memory_space<vmem>>, vector<1x64xf32>
    %28 = vector.broadcast %26 : vector<64x1xf32> to vector<64x64xf32>
    %29 = vector.broadcast %27 : vector<1x64xf32> to vector<64x64xf32>
    %30 = arith.addf %28, %29 : vector<64x64xf32>
    %cst_15 = arith.constant 0.000000e+00 : f32
    %31 = vector.broadcast %cst_15 : f32 to vector<64x64xf32>
    %32 = arith.cmpf ogt, %30, %31 : vector<64x64xf32>
    %cst_16 = arith.constant 2.000000e-01 : f32
    %33 = vector.broadcast %cst_16 : f32 to vector<64x64xf32>
    %34 = arith.mulf %33, %30 : vector<64x64xf32>
    %35 = arith.select %32, %30, %34 : vector<64x64xi1>, vector<64x64xf32>
    %cst_17 = arith.constant 0.000000e+00 : f32
    %36 = vector.broadcast %cst_17 : f32 to vector<64x64xf32>
    %37 = arith.subf %36, %35 : vector<64x64xf32>
    %38 = math.exp %37 : vector<64x64xf32>
    %39 = arith.mulf %38, %1 : vector<64x64xf32>
    %cst_18 = arith.constant dense<0.000000e+00> : vector<64xf32>
    %40 = vector.multi_reduction <add>, %39, %cst_18 [1] : vector<64x64xf32> to vector<64xf32>
    %41 = vector.shape_cast %40 : vector<64xf32> to vector<64x1xf32>
    %cst_19 = arith.constant 9.99999968E-21 : f32
    %42 = vector.broadcast %cst_19 : f32 to vector<64x1xf32>
    %43 = arith.maximumf %41, %42 : vector<64x1xf32>
    %44 = arith.truncf %39 : vector<64x64xf32> to vector<64x64xbf16>
    %c0_20 = arith.constant 0 : index
    %c64 = arith.constant 64 : index
    %45 = vector.load %arg4[%c0_20, %c64] : memref<64x128xbf16, #tpu.memory_space<vmem>>, vector<64x64xbf16>
    %cst_21 = arith.constant dense<0.000000e+00> : vector<64x64xf32>
    %46 = tpu.matmul %44, %45, %cst_21 {dimension_numbers = #tpu.dot_dimension_numbers<[1], [0], [0], [1], [0, 0, 1, 1], [], []>} : vector<64x64xbf16>, vector<64x64xbf16>, vector<64x64xf32> -> vector<64x64xf32>
    %47 = tpu.reciprocal %43 {approx = true} : vector<64x1xf32> -> vector<64x1xf32>
    %48 = vector.broadcast %47 : vector<64x1xf32> to vector<64x64xf32>
    %49 = arith.mulf %46, %48 : vector<64x64xf32>
    %50 = tpu.concatenate %25, %49 in 1 : vector<64x64xf32>, vector<64x64xf32> -> vector<64x128xf32>
    %cst_22 = arith.constant 0.000000e+00 : f32
    %51 = vector.broadcast %cst_22 : f32 to vector<64x128xf32>
    %52 = arith.cmpf ogt, %50, %51 : vector<64x128xf32>
    %cst_23 = arith.constant 0.000000e+00 : f32
    %53 = vector.broadcast %cst_23 : f32 to vector<64x128xf32>
    %54 = arith.minimumf %50, %53 : vector<64x128xf32>
    %55 = math.exp %54 : vector<64x128xf32>
    %cst_24 = arith.constant 1.000000e+00 : f32
    %56 = vector.broadcast %cst_24 : f32 to vector<64x128xf32>
    %57 = arith.subf %55, %56 : vector<64x128xf32>
    %58 = arith.select %52, %50, %57 : vector<64x128xi1>, vector<64x128xf32>
    %c0_25 = arith.constant 0 : index
    %c0_26 = arith.constant 0 : index
    %59 = vector.load %arg5[%c0_25, %c0_26] : memref<64x128xf32, #tpu.memory_space<vmem>>, vector<64x128xf32>
    tpu.vector_store %arg5[%c0_25, %c0_26], %58 {strides = array<i32>} : memref<64x128xf32, #tpu.memory_space<vmem>>, vector<64x128xf32>,
    return
  }
  func.func @transform_0(%arg0: i32) -> (i32, i32) {
    %c0_i32 = arith.constant 0 : i32
    %c0_i32_0 = arith.constant 0 : i32
    return %arg0, %c0_i32 : i32, i32
  }
  func.func @transform_1(%arg0: i32) -> (i32, i32) {
    %c0_i32 = arith.constant 0 : i32
    %c0_i32_0 = arith.constant 0 : i32
    %c0_i32_1 = arith.constant 0 : i32
    return %c0_i32, %c0_i32_0 : i32, i32
  }
  func.func @transform_2(%arg0: i32) -> (i32, i32) {
    %c0_i32 = arith.constant 0 : i32
    %c0_i32_0 = arith.constant 0 : i32
    return %arg0, %c0_i32 : i32, i32
  }
  func.func @transform_3(%arg0: i32) -> (i32, i32) {
    %c0_i32 = arith.constant 0 : i32
    %c0_i32_0 = arith.constant 0 : i32
    %c0_i32_1 = arith.constant 0 : i32
    return %c0_i32, %c0_i32_0 : i32, i32
  }
  func.func @transform_4(%arg0: i32) -> (i32, i32) {
    %c0_i32 = arith.constant 0 : i32
    %c0_i32_0 = arith.constant 0 : i32
    return %arg0, %c0_i32 : i32, i32
  }
}

module attributes {stable_mosaic.version = 11 : i64} {
  func.func @gat_project_kernel(%arg0: i32, %arg1: memref<64x128xf32, #tpu.memory_space<vmem>>, %arg2: memref<128x64xbf16, #tpu.memory_space<vmem>>, %arg3: memref<128x4xbf16, #tpu.memory_space<vmem>>, %arg4: memref<64x64xbf16, #tpu.memory_space<vmem>>, %arg5: memref<64x4xf32, #tpu.memory_space<vmem>>) attributes {dimension_semantics = [#tpu.dimension_semantics<parallel>], iteration_bounds = array<i64: 1>, scalar_prefetch = 0 : i64, scratch_operands = 0 : i64, tpu.core_type = #tpu.core_type<tc>, window_params = [{transform_indices = @transform_0, window_bounds = array<i64: 64, 128>}, {pipeline_mode = #tpu.pipeline_mode<synchronous>, transform_indices = @transform_1, window_bounds = array<i64: 128, 64>}, {pipeline_mode = #tpu.pipeline_mode<synchronous>, transform_indices = @transform_2, window_bounds = array<i64: 128, 4>}, {transform_indices = @transform_3, window_bounds = array<i64: 64, 64>}, {transform_indices = @transform_4, window_bounds = array<i64: 64, 4>}]} {
    %c0 = arith.constant 0 : index
    %c0_0 = arith.constant 0 : index
    %0 = vector.load %arg1[%c0, %c0_0] : memref<64x128xf32, #tpu.memory_space<vmem>>, vector<64x128xf32>
    %1 = arith.truncf %0 : vector<64x128xf32> to vector<64x128xbf16>
    %c0_1 = arith.constant 0 : index
    %c0_2 = arith.constant 0 : index
    %2 = vector.load %arg2[%c0_1, %c0_2] : memref<128x64xbf16, #tpu.memory_space<vmem>>, vector<128x64xbf16>
    %cst = arith.constant dense<0.000000e+00> : vector<64x64xf32>
    %3 = tpu.matmul %1, %2, %cst {dimension_numbers = #tpu.dot_dimension_numbers<[1], [0], [0], [1], [0, 0, 1, 1], [], []>} : vector<64x128xbf16>, vector<128x64xbf16>, vector<64x64xf32> -> vector<64x64xf32>
    %4 = arith.truncf %3 : vector<64x64xf32> to vector<64x64xbf16>
    %c0_3 = arith.constant 0 : index
    %c0_4 = arith.constant 0 : index
    %5 = vector.load %arg4[%c0_3, %c0_4] : memref<64x64xbf16, #tpu.memory_space<vmem>>, vector<64x64xbf16>
    tpu.vector_store %arg4[%c0_3, %c0_4], %4 {strides = array<i32>} : memref<64x64xbf16, #tpu.memory_space<vmem>>, vector<64x64xbf16>,
    %c0_5 = arith.constant 0 : index
    %c0_6 = arith.constant 0 : index
    %6 = vector.load %arg3[%c0_5, %c0_6] : memref<128x4xbf16, #tpu.memory_space<vmem>>, vector<128x4xbf16>
    %cst_7 = arith.constant dense<0.000000e+00> : vector<64x4xf32>
    %7 = tpu.matmul %1, %6, %cst_7 {dimension_numbers = #tpu.dot_dimension_numbers<[1], [0], [0], [1], [0, 0, 1, 1], [], []>} : vector<64x128xbf16>, vector<128x4xbf16>, vector<64x4xf32> -> vector<64x4xf32>
    %c0_8 = arith.constant 0 : index
    %c0_9 = arith.constant 0 : index
    %8 = vector.load %arg5[%c0_8, %c0_9] : memref<64x4xf32, #tpu.memory_space<vmem>>, vector<64x4xf32>
    tpu.vector_store %arg5[%c0_8, %c0_9], %7 {strides = array<i32>} : memref<64x4xf32, #tpu.memory_space<vmem>>, vector<64x4xf32>,
    return
  }
  func.func @transform_0(%arg0: i32) -> (i32, i32) {
    %c0_i32 = arith.constant 0 : i32
    %c0_i32_0 = arith.constant 0 : i32
    return %arg0, %c0_i32 : i32, i32
  }
  func.func @transform_1(%arg0: i32) -> (i32, i32) {
    %c0_i32 = arith.constant 0 : i32
    %c0_i32_0 = arith.constant 0 : i32
    %c0_i32_1 = arith.constant 0 : i32
    return %c0_i32, %c0_i32_0 : i32, i32
  }
  func.func @transform_2(%arg0: i32) -> (i32, i32) {
    %c0_i32 = arith.constant 0 : i32
    %c0_i32_0 = arith.constant 0 : i32
    %c0_i32_1 = arith.constant 0 : i32
    return %c0_i32, %c0_i32_0 : i32, i32
  }
  func.func @transform_3(%arg0: i32) -> (i32, i32) {
    %c0_i32 = arith.constant 0 : i32
    %c0_i32_0 = arith.constant 0 : i32
    return %arg0, %c0_i32 : i32, i32
  }
  func.func @transform_4(%arg0: i32) -> (i32, i32) {
    %c0_i32 = arith.constant 0 : i32
    %c0_i32_0 = arith.constant 0 : i32
    return %arg0, %c0_i32 : i32, i32
  }
}

module attributes {stable_mosaic.version = 11 : i64} {
  func.func @gat_attention_kernel(%arg0: i32, %arg1: memref<64x2xf32, #tpu.memory_space<vmem>>, %arg2: memref<2x64xf32, #tpu.memory_space<vmem>>, %arg3: memref<64x64xbf16, #tpu.memory_space<vmem>>, %arg4: memref<64x64xbf16, #tpu.memory_space<vmem>>, %arg5: memref<64x64xf32, #tpu.memory_space<vmem>>) attributes {dimension_semantics = [#tpu.dimension_semantics<parallel>], iteration_bounds = array<i64: 1>, scalar_prefetch = 0 : i64, scratch_operands = 0 : i64, tpu.core_type = #tpu.core_type<tc>, window_params = [{transform_indices = @transform_0, window_bounds = array<i64: 64, 2>}, {pipeline_mode = #tpu.pipeline_mode<synchronous>, transform_indices = @transform_1, window_bounds = array<i64: 2, 64>}, {transform_indices = @transform_2, window_bounds = array<i64: 64, 64>}, {pipeline_mode = #tpu.pipeline_mode<synchronous>, transform_indices = @transform_3, window_bounds = array<i64: 64, 64>}, {transform_indices = @transform_4, window_bounds = array<i64: 64, 64>}]} {
    %c0 = arith.constant 0 : index
    %c0_0 = arith.constant 0 : index
    %0 = vector.load %arg3[%c0, %c0_0] : memref<64x64xbf16, #tpu.memory_space<vmem>>, vector<64x64xbf16>
    %1 = arith.extf %0 : vector<64x64xbf16> to vector<64x64xf32>
    %c0_1 = arith.constant 0 : index
    %c0_2 = arith.constant 0 : index
    %2 = vector.load %arg1[%c0_1, %c0_2] : memref<64x2xf32, #tpu.memory_space<vmem>>, vector<64x1xf32>
    %c0_3 = arith.constant 0 : index
    %c0_4 = arith.constant 0 : index
    %3 = vector.load %arg2[%c0_3, %c0_4] : memref<2x64xf32, #tpu.memory_space<vmem>>, vector<1x64xf32>
    %4 = vector.broadcast %2 : vector<64x1xf32> to vector<64x64xf32>
    %5 = vector.broadcast %3 : vector<1x64xf32> to vector<64x64xf32>
    %6 = arith.addf %4, %5 : vector<64x64xf32>
    %cst = arith.constant 0.000000e+00 : f32
    %7 = vector.broadcast %cst : f32 to vector<64x64xf32>
    %8 = arith.cmpf ogt, %6, %7 : vector<64x64xf32>
    %cst_5 = arith.constant 2.000000e-01 : f32
    %9 = vector.broadcast %cst_5 : f32 to vector<64x64xf32>
    %10 = arith.mulf %9, %6 : vector<64x64xf32>
    %11 = arith.select %8, %6, %10 : vector<64x64xi1>, vector<64x64xf32>
    %cst_6 = arith.constant 0.000000e+00 : f32
    %12 = vector.broadcast %cst_6 : f32 to vector<64x64xf32>
    %13 = arith.subf %12, %11 : vector<64x64xf32>
    %14 = math.exp %13 : vector<64x64xf32>
    %15 = arith.mulf %14, %1 : vector<64x64xf32>
    %cst_7 = arith.constant dense<0.000000e+00> : vector<64xf32>
    %16 = vector.multi_reduction <add>, %15, %cst_7 [1] : vector<64x64xf32> to vector<64xf32>
    %17 = vector.shape_cast %16 : vector<64xf32> to vector<64x1xf32>
    %cst_8 = arith.constant 9.99999968E-21 : f32
    %18 = vector.broadcast %cst_8 : f32 to vector<64x1xf32>
    %19 = arith.maximumf %17, %18 : vector<64x1xf32>
    %20 = arith.truncf %15 : vector<64x64xf32> to vector<64x64xbf16>
    %c0_9 = arith.constant 0 : index
    %c0_10 = arith.constant 0 : index
    %21 = vector.load %arg4[%c0_9, %c0_10] : memref<64x64xbf16, #tpu.memory_space<vmem>>, vector<64x32xbf16>
    %cst_11 = arith.constant dense<0.000000e+00> : vector<64x32xf32>
    %22 = tpu.matmul %20, %21, %cst_11 {dimension_numbers = #tpu.dot_dimension_numbers<[1], [0], [0], [1], [0, 0, 1, 1], [], []>} : vector<64x64xbf16>, vector<64x32xbf16>, vector<64x32xf32> -> vector<64x32xf32>
    %23 = tpu.reciprocal %19 {approx = true} : vector<64x1xf32> -> vector<64x1xf32>
    %24 = vector.broadcast %23 : vector<64x1xf32> to vector<64x32xf32>
    %25 = arith.mulf %22, %24 : vector<64x32xf32>
    %c0_12 = arith.constant 0 : index
    %c1 = arith.constant 1 : index
    %26 = vector.load %arg1[%c0_12, %c1] : memref<64x2xf32, #tpu.memory_space<vmem>>, vector<64x1xf32>
    %c1_13 = arith.constant 1 : index
    %c0_14 = arith.constant 0 : index
    %27 = vector.load %arg2[%c1_13, %c0_14] : memref<2x64xf32, #tpu.memory_space<vmem>>, vector<1x64xf32>
    %28 = vector.broadcast %26 : vector<64x1xf32> to vector<64x64xf32>
    %29 = vector.broadcast %27 : vector<1x64xf32> to vector<64x64xf32>
    %30 = arith.addf %28, %29 : vector<64x64xf32>
    %cst_15 = arith.constant 0.000000e+00 : f32
    %31 = vector.broadcast %cst_15 : f32 to vector<64x64xf32>
    %32 = arith.cmpf ogt, %30, %31 : vector<64x64xf32>
    %cst_16 = arith.constant 2.000000e-01 : f32
    %33 = vector.broadcast %cst_16 : f32 to vector<64x64xf32>
    %34 = arith.mulf %33, %30 : vector<64x64xf32>
    %35 = arith.select %32, %30, %34 : vector<64x64xi1>, vector<64x64xf32>
    %cst_17 = arith.constant 0.000000e+00 : f32
    %36 = vector.broadcast %cst_17 : f32 to vector<64x64xf32>
    %37 = arith.subf %36, %35 : vector<64x64xf32>
    %38 = math.exp %37 : vector<64x64xf32>
    %39 = arith.mulf %38, %1 : vector<64x64xf32>
    %cst_18 = arith.constant dense<0.000000e+00> : vector<64xf32>
    %40 = vector.multi_reduction <add>, %39, %cst_18 [1] : vector<64x64xf32> to vector<64xf32>
    %41 = vector.shape_cast %40 : vector<64xf32> to vector<64x1xf32>
    %cst_19 = arith.constant 9.99999968E-21 : f32
    %42 = vector.broadcast %cst_19 : f32 to vector<64x1xf32>
    %43 = arith.maximumf %41, %42 : vector<64x1xf32>
    %44 = arith.truncf %39 : vector<64x64xf32> to vector<64x64xbf16>
    %c0_20 = arith.constant 0 : index
    %c32 = arith.constant 32 : index
    %45 = vector.load %arg4[%c0_20, %c32] : memref<64x64xbf16, #tpu.memory_space<vmem>>, vector<64x32xbf16>
    %cst_21 = arith.constant dense<0.000000e+00> : vector<64x32xf32>
    %46 = tpu.matmul %44, %45, %cst_21 {dimension_numbers = #tpu.dot_dimension_numbers<[1], [0], [0], [1], [0, 0, 1, 1], [], []>} : vector<64x64xbf16>, vector<64x32xbf16>, vector<64x32xf32> -> vector<64x32xf32>
    %47 = tpu.reciprocal %43 {approx = true} : vector<64x1xf32> -> vector<64x1xf32>
    %48 = vector.broadcast %47 : vector<64x1xf32> to vector<64x32xf32>
    %49 = arith.mulf %46, %48 : vector<64x32xf32>
    %50 = tpu.concatenate %25, %49 in 1 : vector<64x32xf32>, vector<64x32xf32> -> vector<64x64xf32>
    %c0_22 = arith.constant 0 : index
    %c0_23 = arith.constant 0 : index
    %51 = vector.load %arg5[%c0_22, %c0_23] : memref<64x64xf32, #tpu.memory_space<vmem>>, vector<64x64xf32>
    tpu.vector_store %arg5[%c0_22, %c0_23], %50 {strides = array<i32>} : memref<64x64xf32, #tpu.memory_space<vmem>>, vector<64x64xf32>,
    return
  }
  func.func @transform_0(%arg0: i32) -> (i32, i32) {
    %c0_i32 = arith.constant 0 : i32
    %c0_i32_0 = arith.constant 0 : i32
    return %arg0, %c0_i32 : i32, i32
  }
  func.func @transform_1(%arg0: i32) -> (i32, i32) {
    %c0_i32 = arith.constant 0 : i32
    %c0_i32_0 = arith.constant 0 : i32
    %c0_i32_1 = arith.constant 0 : i32
    return %c0_i32, %c0_i32_0 : i32, i32
  }
  func.func @transform_2(%arg0: i32) -> (i32, i32) {
    %c0_i32 = arith.constant 0 : i32
    %c0_i32_0 = arith.constant 0 : i32
    return %arg0, %c0_i32 : i32, i32
  }
  func.func @transform_3(%arg0: i32) -> (i32, i32) {
    %c0_i32 = arith.constant 0 : i32
    %c0_i32_0 = arith.constant 0 : i32
    %c0_i32_1 = arith.constant 0 : i32
    return %c0_i32, %c0_i32_0 : i32, i32
  }
  func.func @transform_4(%arg0: i32) -> (i32, i32) {
    %c0_i32 = arith.constant 0 : i32
    %c0_i32_0 = arith.constant 0 : i32
    return %arg0, %c0_i32 : i32, i32
  }
}

</mosaic_0001>

<bundles_post_ra>
// kernel: gat_forward.4
= control target key start
LH: loop header
LB: loop body
LE: loop exit
PB: predicated region body
PF: predicated region fallthrough
CT: control target
= control target key end

     0   :  { %vm45_vm0 = vcmask 261120   ;;  %vm148_vm1 = vcmask 31744   ;;  %s333_s1 = inlined_call_operand.vmem [shape: bf16[32,128], index: 1, kind: input, shape index: {}]   ;;  %s334_s2 = inlined_call_operand.vmem [shape: bf16[32,4], index: 2, kind: input, shape index: {}]   ;;  %s335_s0 = inlined_call_operand.vmem [shape: f32[64,32], index: 0, kind: input, shape index: {}]   ;;  %s336_s4 = inlined_call_operand.vmem [shape: f32[64,4], index: 4, kind: output, shape index: {1}]   ;;  %s337_s3 = inlined_call_operand.vmem [shape: bf16[64,128], index: 3, kind: output, shape index: {0}]  }
   0x1   :  { %v190_v0 = vld [vmem:[%s333_s1 + $0x8] sm:$0xff]  ;;  %v189_v2 = vld [vmem:[%s333_s1] sm:$0xff]  ;;  %v19_v10 = vld [vmem:[%s335_s0 + $0x10] sm:$0xff] }
   0x2   :  { %v192_v1 = vld [vmem:[%s334_s2 + $0x8] sm:$0xff]  ;;  %v17_v3 = vld [vmem:[%s335_s0] sm:$0xff]  ;;  %64 = vmatpush.bf16.msra.mxu0 %v190_v0  ;;  %216 = vmatpush.bf16.msra.mxu2 %v190_v0  ;;  %v20_v11 = vld [vmem:[%s335_s0 + $0x18] sm:$0xff] }
   0x3   :  { %v18_v4 = vld [vmem:[%s335_s0 + $0x8] sm:$0xff]  ;;  %v21_v5 = vld [vmem:[%s335_s0 + $0x20] sm:$0xff]  ;;  %125 = vmatpush.bf16.msra.mxu1 %v192_v1  ;;  %218 = vmatpush.bf16.msra.mxu3 %v192_v1  ;;  %v23_v12 = vld [vmem:[%s335_s0 + $0x30] sm:$0xff]  ;;  %v26_v14 = vpack.c.bf16 %v20_v11, %v19_v10 }
   0x4   :  { %v22_v6 = vld [vmem:[%s335_s0 + $0x28] sm:$0xff]  ;;  %v191_v7 = vld [vmem:[%s334_s2] sm:$0xff]  ;;  %v25_v8 = vpack.c.bf16 %v18_v4, %v17_v3  ;;  %v24_v13 = vld [vmem:[%s335_s0 + $0x38] sm:$0xff] }
   0x5   :  { %v27_v9 = vpack.c.bf16 %v22_v6, %v21_v5  ;;  %v28_v15 = vpack.c.bf16 %v24_v13, %v23_v12 }
   0x6   :  { %65 = vmatpush.bf16.msra.mxu0 %v189_v2  ;;  %217 = vmatpush.bf16.msra.mxu2 %v189_v2 }
   0x7   :  { %126 = vmatpush.bf16.msra.mxu1 %v191_v7  ;;  %219 = vmatpush.bf16.msra.mxu3 %v191_v7 }
   0x9   :  { %173 = vmatmul.msk.bf16.vlgmr.msra.gmra.mxu0 %vm45_vm0, %v25_v8  ;;  %175 = vmatmul.msk.bf16.vlgmr.msra.gmra.mxu2 %vm45_vm0, %v27_v9 }
   0xa   :  { %185 = vmatmul.msk.bf16.vlgmr.msra.gmra.mxu1 %vm45_vm0, %v25_v8  ;;  %187 = vmatmul.msk.bf16.vlgmr.msra.gmra.mxu3 %vm45_vm0, %v27_v9 }
  0x19   :  { %174 = vmatmul.msk.bf16.gmra.mxu0 %vm45_vm0, %v26_v14  ;;  %176 = vmatmul.msk.bf16.gmra.mxu2 %vm45_vm0, %v28_v15 }
  0x1a   :  { %186 = vmatmul.msk.bf16.gmra.mxu1 %vm45_vm0, %v26_v14  ;;  %188 = vmatmul.msk.bf16.gmra.mxu3 %vm45_vm0, %v28_v15 }
  0x86   :  { %v67_v16 = vpop.f32.mrf.mxu0 }
  0x87   :  { %v128_v17 = vpop.f32.mrf.mxu1 }
  0x88   :  { %149 = vst.msk [vmem:[%s336_s4] sm:$0xff] %vm148_vm1, %v128_v17 }
  0x8c   :  { %v77_v18 = vpop.f32.mrf.mxu2 }
  0x8d   :  { %v138_v19 = vpop.f32.mrf.mxu3 }
  0x8e   :  { %153 = vst.msk [vmem:[%s336_s4 + $0x20] sm:$0xff] %vm148_vm1, %v138_v19  ;;  %v69_v20 = vpop.f32.mrf.mxu0 }
  0x8f   :  { %v196_v21 = vpack.c.bf16 %v69_v20, %v67_v16  ;;  %v130_v22 = vpop.f32.mrf.mxu1 }
  0x90   :  { %150 = vst.msk [vmem:[%s336_s4 + $0x8] sm:$0xff] %vm148_vm1, %v130_v22 }
  0x91   :  { %197 = vst [vmem:[%s337_s3] sm:$0xff] %v196_v21  }
  0x94   :  { %v79_v23 = vpop.f32.mrf.mxu2 }
  0x95   :  { %v206_v24 = vpack.c.bf16 %v79_v23, %v77_v18  ;;  %v140_v25 = vpop.f32.mrf.mxu3 }
  0x96   :  { %154 = vst.msk [vmem:[%s336_s4 + $0x28] sm:$0xff] %vm148_vm1, %v140_v25  ;;  %v72_v26 = vpop.f32.mrf.mxu0 }
  0x97   :  { %214 = vst [vmem:[%s337_s3 + $0x10] sm:$0xff] %v206_v24   ;;  %v133_v27 = vpop.f32.mrf.mxu1 }
  0x98   :  { %151 = vst.msk [vmem:[%s336_s4 + $0x10] sm:$0xff] %vm148_vm1, %v133_v27 }
  0x9c   :  { %v82_v28 = vpop.f32.mrf.mxu2 }
  0x9d   :  { %v143_v29 = vpop.f32.mrf.mxu3 }
  0x9e   :  { %155 = vst.msk [vmem:[%s336_s4 + $0x30] sm:$0xff] %vm148_vm1, %v143_v29  ;;  %v74_v30 = vpop.f32.mrf.mxu0 }
  0x9f   :  { %v201_v31 = vpack.c.bf16 %v74_v30, %v72_v26  ;;  %v135_v32 = vpop.f32.mrf.mxu1 }
  0xa0   :  { %152 = vst.msk [vmem:[%s336_s4 + $0x18] sm:$0xff] %vm148_vm1, %v135_v32 }
  0xa1   :  { %213 = vst [vmem:[%s337_s3 + $0x8] sm:$0xff] %v201_v31  }
  0xa4   :  { %v84_v33 = vpop.f32.mrf.mxu2 }
  0xa5   :  { %v211_v34 = vpack.c.bf16 %v84_v33, %v82_v28  ;;  %v145_v35 = vpop.f32.mrf.mxu3 }
  0xa6   :  { %156 = vst.msk [vmem:[%s336_s4 + $0x38] sm:$0xff] %vm148_vm1, %v145_v35 }
  0xa7   :  { %215 = vst [vmem:[%s337_s3 + $0x18] sm:$0xff] %v211_v34  }

// kernel: gat_forward.5
= control target key start
LH: loop header
LB: loop body
LE: loop exit
PB: predicated region body
PF: predicated region fallthrough
CT: control target
= control target key end

     0   :  { %v732_v0 = vmov 1   ;;  %s733_s21 = smov 64   ;;  %v734_v11 = vmov 0   ;;  %vm148_vm1 = vcmask 523264   ;;  %s977_s0 = inlined_call_operand.vmem [shape: f32[64,2], index: 0, kind: input, shape index: {}]   ;;  %s978_s3 = inlined_call_operand.vmem [shape: bf16[64,128], index: 3, kind: input, shape index: {}]   ;;  %s979_s1 = inlined_call_operand.vmem [shape: f32[2,64], index: 1, kind: input, shape index: {}]   ;;  %s980_s2 = inlined_call_operand.vmem [shape: bf16[64,64], index: 2, kind: input, shape index: {}]   ;;  %s981_s4 = inlined_call_operand.vmem [shape: f32[64,128], index: 4, kind: output, shape index: {}]  }
   0x1   :  { %645 = vset.pattern.permute.xlu2 %v732_v0  ;;  %643 = vset.pattern.permute.xlu0 %v732_v0  ;;  %v38_v1 = vld [vmem:[%s977_s0 + $0x20] sm:$0xff]  ;;  %v35_v2 = vld [vmem:[%s977_s0 + $0x8] sm:$0xff]  ;;  %v612_v3 = vld [vmem:[%s978_s3 + $0x18] sm:$0xff] }
   0x2   :  { %292 = vperm.xlu0 %643, %v38_v1   ;;  %280 = vperm.xlu2 %645, %v35_v2   ;;  %v611_v4 = vld [vmem:[%s978_s3 + $0x10] sm:$0xff]  ;;  %v39_v5 = vld [vmem:[%s977_s0 + $0x28] sm:$0xff]  ;;  %v34_v6 = vld [vmem:[%s977_s0] sm:$0xff] }
   0x3   :  { %414 = vrot.lane.b32.xlu1 %v612_v3, %s733_s21  ;;  %632 = vmatpush.bf16.msra.mxu2 %v612_v3  ;;  %v610_v7 = vld [vmem:[%s978_s3 + $0x8] sm:$0xff]  ;;  %v609_v8 = vld [vmem:[%s978_s3] sm:$0xff]  ;;  %v41_v9 = vld [vmem:[%s977_s0 + $0x38] sm:$0xff] }
   0x4   :  { %644 = vset.pattern.permute.xlu1 %v732_v0  ;;  %233 = vmatpush.bf16.msra.mxu0 %v612_v3  ;;  %v40_v10 = vld [vmem:[%s977_s0 + $0x30] sm:$0xff]  ;;  %v37_v12 = vld [vmem:[%s977_s0 + $0x18] sm:$0xff]  ;;  %v803_v14 = vld [vmem:[%s979_s1 + $0x1] ss:$0 sm:$0xff] }
   0x5   :  { %v36_v13 = vld [vmem:[%s977_s0 + $0x10] sm:$0xff]  ;;  %v809_v22 = vld [vmem:[%s980_s2] sm:$0xff]  }
   0x6   :  { %v616_v23 = vunpack.c.h.bf16 %v809_v22  ;;  %v823_v35 = vld [vmem:[%s979_s1] ss:$0 sm:$0xff] }
   0x7   :  { %633 = vmatpush.bf16.msra.mxu2 %v611_v4 }
   0x8   :  { %234 = vmatpush.bf16.msra.mxu0 %v611_v4 }
   0xa   :  { %296 = vperm.xlu0 %643, %v39_v5   ;;  %412 = vrot.lane.b32.xlu2 %v611_v4, %s733_s21 }
   0xb   :  { %276 = vperm.xlu1 %644, %v34_v6   ;;  %634 = vmatpush.bf16.msra.mxu2 %v610_v7 }
   0xc   :  { %235 = vmatpush.bf16.msra.mxu0 %v610_v7 }
   0xf   :  { %635 = vmatpush.bf16.msra.mxu2 %v609_v8 }
  0x10   :  { %236 = vmatpush.bf16.msra.mxu0 %v609_v8 }
  0x12   :  { %410 = vrot.lane.b32.xlu0 %v610_v7, %s733_s21  ;;  %304 = vperm.xlu2 %645, %v41_v9  }
  0x13   :  { %300 = vperm.xlu1 %644, %v40_v10   ;;  %646 = vset.pattern.permute.xlu0 %v734_v11 }
  0x1a   :  { %408 = vrot.lane.b32.xlu0 %v609_v8, %s733_s21  ;;  %288 = vperm.xlu2 %645, %v37_v12  }
  0x1b   :  { %284 = vperm.xlu1 %644, %v36_v13  }
  0x22   :  { %65 = vperm.xlu0 %646, %v38_v1   ;;  %648 = vset.pattern.permute.xlu2 %v734_v11 }
  0x23   :  { %45 = vperm.xlu2 %648, %v34_v6   ;;  %647 = vset.pattern.permute.xlu1 %v734_v11 }
  0x24   :  { %70 = vperm.xlu1 %647, %v39_v5  }
  0x2a   :  { %80 = vperm.xlu0 %646, %v41_v9   ;;  %v615_v9 = vunpack.c.l.bf16 %v809_v22 }
  0x2b   :  { %75 = vperm.xlu2 %648, %v40_v10  }
  0x2c   :  { %50 = vperm.xlu1 %647, %v35_v2   ;;  %v833_v2 = vld [vmem:[%s980_s2 + $0x10] sm:$0xff]  }
  0x2d   :  { %v623_v6 = vunpack.c.l.bf16 %v833_v2  ;;  %v624_v7 = vunpack.c.h.bf16 %v833_v2 }
  0x32   :  { %649 = vset.pattern.permute.xlu0 %v732_v0 }
  0x33   :  { %60 = vperm.xlu2 %648, %v37_v12  }
  0x34   :  { %55 = vperm.xlu1 %647, %v36_v13  }
  0x5c   :  { %v281_v15 = vpop.permute.xlu2 %280 }
  0x5d   :  { %v309_v16 = vadd.f32 %v803_v14, %v281_v15  ;;  %v841_v15 = vld [vmem:[%s980_s2 + $0x8] sm:$0xff]  }
  0x5f   :  { %vm317_vm0 = vcmp.gt.f32.partialorder %v309_v16, 0.0  ;;  %v325_v17 = vmul.f32 0.2, %v309_v16 }
  0x61   :  { %v333_v18 = vsel %vm317_vm0, %v309_v16, %v325_v17 }
  0x62   :  { %v341_v19 = vsub.f32 0.0, %v333_v18 }
  0x64   :  { %v350_v20 = vmul.f32 1.442695, %v341_v19  ;;  %v413_v21 = vpop.permute.xlu2 %412 }
  0x66   :  { %652 = vpow2.f32 %v350_v20 }
  0x6c   :  { %v653_v24 = vpop.eup %652  ;;  %v305_v25 = vpop.permute.xlu2 %304 }
  0x6d   :  { %v814_v26 = vmul.f32 %v653_v24, %v616_v23  ;;  %v315_v42 = vadd.f32 %v803_v14, %v305_v25 }
  0x6f   :  { %v375_v27 = vsel %vm148_vm1, %v814_v26, 0.0  ;;  %v331_v51 = vmul.f32 0.2, %v315_v42  ;;  %vm323_vm7 = vcmp.gt.f32.partialorder %v315_v42, 0.0 }
  0x70   :  { %376 = vadd.xlane.f32.xlu2 %v375_v27 }
  0x71   :  { %v339_v0 = vsel %vm323_vm7, %v315_v42, %v331_v51 }
  0x72   :  { %v347_v4 = vsub.f32 0.0, %v339_v0 }
  0x74   :  { %v293_v28 = vpop.permute.xlu0 %292  ;;  %v289_v29 = vpop.permute.xlu2 %288  ;;  %v362_v17 = vmul.f32 1.442695, %v347_v4 }
  0x75   :  { %v312_v30 = vadd.f32 %v803_v14, %v293_v28  ;;  %v415_v31 = vpop.permute.xlu1 %414  ;;  %v311_v33 = vadd.f32 %v803_v14, %v289_v29 }
  0x76   :  { %436 = vmatpush.bf16.msra.mxu1 %v415_v31  ;;  %636 = vmatpush.bf16.msra.mxu3 %v415_v31 }
  0x77   :  { %vm320_vm2 = vcmp.gt.f32.partialorder %v312_v30, 0.0  ;;  %v328_v32 = vmul.f32 0.2, %v312_v30  ;;  %v327_v37 = vmul.f32 0.2, %v311_v33  ;;  %vm319_vm3 = vcmp.gt.f32.partialorder %v311_v33, 0.0 }
  0x79   :  { %v336_v34 = vsel %vm320_vm2, %v312_v30, %v328_v32  ;;  %v335_v46 = vsel %vm319_vm3, %v311_v33, %v327_v37  ;;  %v620_v33 = vunpack.c.h.bf16 %v841_v15 }
  0x7a   :  { %437 = vmatpush.bf16.msra.mxu1 %v413_v21  ;;  %637 = vmatpush.bf16.msra.mxu3 %v413_v21  ;;  %v344_v36 = vsub.f32 0.0, %v336_v34  ;;  %v343_v55 = vsub.f32 0.0, %v335_v46  ;;  %v869_v46 = vld [vmem:[%s980_s2 + $0x18] sm:$0xff]  }
  0x7b   :  { %v627_v51 = vunpack.c.l.bf16 %v869_v46 }
  0x7c   :  { %v297_v38 = vpop.permute.xlu0 %296  ;;  %v356_v45 = vmul.f32 1.442695, %v344_v36  ;;  %v354_v3 = vmul.f32 1.442695, %v343_v55 }
  0x7d   :  { %v313_v39 = vadd.f32 %v803_v14, %v297_v38  ;;  %v46_v40 = vpop.permute.xlu2 %45  ;;  %v277_v41 = vpop.permute.xlu1 %276 }
  0x7e   :  { %v84_v43 = vadd.f32 %v823_v35, %v46_v40  ;;  %v308_v44 = vadd.f32 %v803_v14, %v277_v41  ;;  %654 = vpow2.f32 %v356_v45 }
  0x7f   :  { %vm321_vm4 = vcmp.gt.f32.partialorder %v313_v39, 0.0  ;;  %v329_v47 = vmul.f32 0.2, %v313_v39 }
  0x80   :  { %vm92_vm5 = vcmp.gt.f32.partialorder %v84_v43, 0.0  ;;  %v100_v48 = vmul.f32 0.2, %v84_v43  ;;  %vm316_vm6 = vcmp.gt.f32.partialorder %v308_v44, 0.0  ;;  %v324_v49 = vmul.f32 0.2, %v308_v44 }
  0x81   :  { %v337_v50 = vsel %vm321_vm4, %v313_v39, %v329_v47 }
  0x82   :  { %v345_v52 = vsub.f32 0.0, %v337_v50  ;;  %v108_v53 = vsel %vm92_vm5, %v84_v43, %v100_v48  ;;  %v332_v54 = vsel %vm316_vm6, %v308_v44, %v324_v49 }
  0x83   :  { %v116_v56 = vsub.f32 0.0, %v108_v53  ;;  %v340_v57 = vsub.f32 0.0, %v332_v54  ;;  %v628_v54 = vunpack.c.h.bf16 %v869_v46 }
  0x84   :  { %v358_v58 = vmul.f32 1.442695, %v345_v52  ;;  %v411_v59 = vpop.permute.xlu0 %410  ;;  %v655_v8 = vpop.eup %654 }
  0x85   :  { %v124_v60 = vmul.f32 1.442695, %v116_v56  ;;  %v348_v61 = vmul.f32 1.442695, %v340_v57  ;;  %v76_v62 = vpop.permute.xlu2 %75  ;;  %v301_v63 = vpop.permute.xlu1 %300  ;;  %438 = vmatpush.bf16.msra.mxu1 %v411_v59  ;;  %638 = vmatpush.bf16.msra.mxu3 %v411_v59  ;;  %v368_v20 = vmul.f32 %v655_v8, %v623_v6 }
  0x86   :  { %656 = vpow2.f32 %v358_v58  ;;  %v314_v1 = vadd.f32 %v803_v14, %v301_v63  ;;  %v90_v30 = vadd.f32 %v823_v35, %v76_v62 }
  0x87   :  { %658 = vpow2.f32 %v124_v60  ;;  %v384_v58 = vsel %vm148_vm1, %v368_v20, 0.0 }
  0x88   :  { %660 = vpow2.f32 %v348_v61  ;;  %vm322_vm8 = vcmp.gt.f32.partialorder %v314_v1, 0.0  ;;  %v330_v5 = vmul.f32 0.2, %v314_v1  ;;  %vm98_vm11 = vcmp.gt.f32.partialorder %v90_v30, 0.0 }
  0x89   :  { %662 = vpow2.f32 %v354_v3  ;;  %v619_v3 = vunpack.c.l.bf16 %v841_v15 }
  0x8a   :  { %v338_v10 = vsel %vm322_vm8, %v314_v1, %v330_v5 }
  0x8b   :  { %v346_v12 = vsub.f32 0.0, %v338_v10 }
  0x8c   :  { %v657_v11 = vpop.eup %656  ;;  %v409_v13 = vpop.permute.xlu0 %408 }
  0x8d   :  { %v659_v16 = vpop.eup %658  ;;  %639 = vmatpush.bf16.msra.mxu3 %v409_v13  ;;  %v61_v18 = vpop.permute.xlu2 %60  ;;  %439 = vmatpush.bf16.msra.mxu1 %v409_v13  ;;  %v847_v21 = vmul.f32 %v657_v11, %v624_v7  ;;  %v360_v25 = vmul.f32 1.442695, %v346_v12 }
  0x8e   :  { %v285_v19 = vpop.permute.xlu1 %284  ;;  %v661_v24 = vpop.eup %660  ;;  %v87_v27 = vadd.f32 %v823_v35, %v61_v18  ;;  %v851_v29 = vmul.f32 %v659_v16, %v615_v9 }
  0x8f   :  { %v310_v28 = vadd.f32 %v803_v14, %v285_v19  ;;  %v406_v31 = vpack.c.bf16 %v847_v21, %v368_v20  ;;  %v364_v32 = vmul.f32 %v661_v24, %v615_v9  ;;  %664 = vpow2.f32 %v360_v25  ;;  %v663_v36 = vpop.eup %662 }
  0x90   :  { %vm95_vm9 = vcmp.gt.f32.partialorder %v87_v27, 0.0  ;;  %v103_v34 = vmul.f32 0.2, %v87_v27  ;;  %v149_v14 = vsel %vm148_vm1, %v851_v29, 0.0  ;;  %666 = vpow2.f32 %v362_v17 }
  0x91   :  { %vm318_vm10 = vcmp.gt.f32.partialorder %v310_v28, 0.0  ;;  %v326_v37 = vmul.f32 0.2, %v310_v28  ;;  %599 = vmatmul.msk.bf16.vlgmr.msra.gmra.mxu3 %vm148_vm1, %v406_v31  ;;  %v372_v38 = vsel %vm148_vm1, %v364_v32, 0.0  ;;  %v404_v39 = vpack.c.bf16 %v814_v26, %v364_v32  ;;  %150 = vadd.xlane.f32.xlu0 %v149_v14 }
  0x92   :  { %v111_v40 = vsel %vm95_vm9, %v87_v27, %v103_v34  ;;  %373 = vadd.xlane.f32.xlu1 %v372_v38  ;;  %v864_v45 = vmul.f32 %v663_v36, %v620_v33  ;;  %v106_v26 = vmul.f32 0.2, %v90_v30 }
  0x93   :  { %v334_v41 = vsel %vm318_vm10, %v310_v28, %v326_v37  ;;  %597 = vmatmul.msk.bf16.vlgmr.msra.gmra.mxu1 %vm148_vm1, %v404_v39  ;;  %v119_v42 = vsub.f32 0.0, %v111_v40 }
  0x94   :  { %v342_v43 = vsub.f32 0.0, %v334_v41  ;;  %v66_v44 = vpop.permute.xlu0 %65  ;;  %v381_v57 = vsel %vm148_vm1, %v864_v45, 0.0  ;;  %v114_v59 = vsel %vm98_vm11, %v90_v30, %v106_v26 }
  0x95   :  { %v88_v47 = vadd.f32 %v823_v35, %v66_v44  ;;  %v665_v48 = vpop.eup %664  ;;  %v130_v56 = vmul.f32 1.442695, %v119_v42  ;;  %v122_v4 = vsub.f32 0.0, %v114_v59 }
  0x96   :  { %v352_v49 = vmul.f32 1.442695, %v342_v43  ;;  %v71_v50 = vpop.permute.xlu1 %70  ;;  %v667_v55 = vpop.eup %666  ;;  %v370_v63 = vmul.f32 %v665_v48, %v627_v51 }
  0x97   :  { %vm96_vm12 = vcmp.gt.f32.partialorder %v88_v47, 0.0  ;;  %v104_v52 = vmul.f32 0.2, %v88_v47  ;;  %v89_v53 = vadd.f32 %v823_v35, %v71_v50  ;;  %v371_v1 = vmul.f32 %v667_v55, %v628_v54 }
  0x98   :  { %668 = vpow2.f32 %v352_v49  ;;  %v136_v20 = vmul.f32 1.442695, %v122_v4  ;;  %v390_v24 = vsel %vm148_vm1, %v370_v63, 0.0 }
  0x99   :  { %v112_v60 = vsel %vm96_vm12, %v88_v47, %v104_v52  ;;  %vm97_vm13 = vcmp.gt.f32.partialorder %v89_v53, 0.0  ;;  %v105_v61 = vmul.f32 0.2, %v89_v53  ;;  %382 = vadd.xlane.f32.xlu0 %v381_v57  ;;  %670 = vpow2.f32 %v130_v56 }
  0x9a   :  { %v120_v62 = vsub.f32 0.0, %v112_v60  ;;  %385 = vadd.xlane.f32.xlu1 %v384_v58  ;;  %v407_v16 = vpack.c.bf16 %v371_v1, %v370_v63  ;;  %v393_v25 = vsel %vm148_vm1, %v371_v1, 0.0 }
  0x9b   :  { %v113_v0 = vsel %vm97_vm13, %v89_v53, %v105_v61 }
  0x9c   :  { %v132_v5 = vmul.f32 1.442695, %v120_v62  ;;  %v121_v8 = vsub.f32 0.0, %v113_v0  ;;  %v81_v9 = vpop.permute.xlu0 %80 }
  0x9d   :  { %v91_v10 = vadd.f32 %v823_v35, %v81_v9 }
  0x9e   :  { %v669_v11 = vpop.eup %668  ;;  %672 = vpow2.f32 %v132_v5  ;;  %v134_v12 = vmul.f32 1.442695, %v121_v8  ;;  %v51_v13 = vpop.permute.xlu1 %50 }
  0x9f   :  { %vm99_vm14 = vcmp.gt.f32.partialorder %v91_v10, 0.0  ;;  %v107_v17 = vmul.f32 0.2, %v91_v10  ;;  %v85_v18 = vadd.f32 %v823_v35, %v51_v13  ;;  %v366_v19 = vmul.f32 %v669_v11, %v619_v3  ;;  %v671_v31 = vpop.eup %670 }
  0xa0   :  { %674 = vpow2.f32 %v134_v12  ;;  %v143_v38 = vmul.f32 %v671_v31, %v620_v33 }
  0xa1   :  { %v115_v27 = vsel %vm99_vm14, %v91_v10, %v107_v17  ;;  %vm93_vm15 = vcmp.gt.f32.partialorder %v85_v18, 0.0  ;;  %v101_v28 = vmul.f32 0.2, %v85_v18  ;;  %600 = vmatmul.msk.bf16.gmra.mxu3 %vm148_vm1, %v407_v16  ;;  %v378_v30 = vsel %vm148_vm1, %v366_v19, 0.0  ;;  %391 = vadd.xlane.f32.xlu0 %v390_v24 }
  0xa2   :  { %394 = vadd.xlane.f32.xlu1 %v393_v25  ;;  %v405_v32 = vpack.c.bf16 %v864_v45, %v366_v19  ;;  %379 = vadd.xlane.f32.xlu2 %v378_v30  ;;  %676 = vpow2.f32 %v136_v20  ;;  %v123_v37 = vsub.f32 0.0, %v115_v27  ;;  %v158_v47 = vsel %vm148_vm1, %v143_v38, 0.0 }
  0xa3   :  { %v109_v34 = vsel %vm93_vm15, %v85_v18, %v101_v28 }
  0xa4   :  { %v673_v36 = vpop.eup %672  ;;  %v117_v14 = vsub.f32 0.0, %v109_v34  ;;  %598 = vmatmul.msk.bf16.gmra.mxu1 %vm148_vm1, %v405_v32  ;;  %v138_v45 = vmul.f32 1.442695, %v123_v37 }
  0xa5   :  { %v144_v39 = vmul.f32 %v673_v36, %v623_v6  ;;  %v387_v6 = vsel %vm148_vm1, %v847_v21, 0.0 }
  0xa6   :  { %v675_v40 = vpop.eup %674  ;;  %v126_v41 = vmul.f32 1.442695, %v117_v14  ;;  %v56_v42 = vpop.permute.xlu1 %55 }
  0xa7   :  { %v86_v43 = vadd.f32 %v823_v35, %v56_v42  ;;  %v145_v44 = vmul.f32 %v675_v40, %v624_v7 }
  0xa8   :  { %678 = vpow2.f32 %v126_v41  ;;  %v677_v49 = vpop.eup %676 }
  0xa9   :  { %vm94_vm0 = vcmp.gt.f32.partialorder %v86_v43, 0.0  ;;  %v102_v26 = vmul.f32 0.2, %v86_v43  ;;  %v183_v48 = vpack.c.bf16 %v145_v44, %v144_v39  ;;  %680 = vpow2.f32 %v138_v45 }
  0xaa   :  { %159 = vadd.xlane.f32.xlu1 %v158_v47  ;;  %388 = vadd.xlane.f32.xlu2 %v387_v6  ;;  %v146_v2 = vmul.f32 %v677_v49, %v627_v51 }
  0xab   :  { %v110_v33 = vsel %vm94_vm0, %v86_v43, %v102_v26  ;;  %595 = vmatmul.msk.bf16.vlgmr.msra.gmra.mxu2 %vm148_vm1, %v183_v48 }
  0xac   :  { %v118_v35 = vsub.f32 0.0, %v110_v33  ;;  %v167_v53 = vsel %vm148_vm1, %v146_v2, 0.0 }
  0xae   :  { %v679_v7 = vpop.eup %678  ;;  %v128_v50 = vmul.f32 1.442695, %v118_v35 }
  0xaf   :  { %v141_v52 = vmul.f32 %v679_v7, %v616_v23  ;;  %v681_v56 = vpop.eup %680  ;;  %v161_v23 = vsel %vm148_vm1, %v144_v39, 0.0 }
  0xb0   :  { %682 = vpow2.f32 %v128_v50  ;;  %v147_v51 = vmul.f32 %v681_v56, %v628_v54 }
  0xb1   :  { %v181_v55 = vpack.c.bf16 %v141_v52, %v851_v29  ;;  %v152_v21 = vsel %vm148_vm1, %v141_v52, 0.0  ;;  %v164_v29 = vsel %vm148_vm1, %v145_v44, 0.0 }
  0xb2   :  { %168 = vadd.xlane.f32.xlu1 %v167_v53  ;;  %153 = vadd.xlane.f32.xlu2 %v152_v21  ;;  %v184_v58 = vpack.c.bf16 %v147_v51, %v146_v2  ;;  %v170_v60 = vsel %vm148_vm1, %v147_v51, 0.0 }
  0xb3   :  { %593 = vmatmul.msk.bf16.vlgmr.msra.gmra.mxu0 %vm148_vm1, %v181_v55 }
  0xb6   :  { %v683_v57 = vpop.eup %682 }
  0xb7   :  { %v142_v22 = vmul.f32 %v683_v57, %v619_v3 }
  0xb9   :  { %v155_v59 = vsel %vm148_vm1, %v142_v22, 0.0  ;;  %v182_v61 = vpack.c.bf16 %v143_v38, %v142_v22 }
  0xba   :  { %156 = vadd.xlane.f32.xlu0 %v155_v59  ;;  %162 = vadd.xlane.f32.xlu2 %v161_v23 }
  0xbb   :  { %596 = vmatmul.msk.bf16.gmra.mxu2 %vm148_vm1, %v184_v58 }
  0xc2   :  { %165 = vadd.xlane.f32.xlu0 %v164_v29  ;;  %171 = vadd.xlane.f32.xlu2 %v170_v60 }
  0xc3   :  { %594 = vmatmul.msk.bf16.gmra.mxu0 %vm148_vm1, %v182_v61 }
  0xe3   :  { %v377_v63 = vpop.xlane.xlu2 %376 }
  0xe4   :  { %v397_v9 = vmax.f32 %v377_v63, 1e-20 }
 0x104   :  { %v922_v54 = vpop.xlane.xlu0 %150 }
 0x105   :  { %v374_v15 = vpop.xlane.xlu1 %373  ;;  %v173_v55 = vmax.f32 %v922_v54, 1e-20 }
 0x106   :  { %v396_v46 = vmax.f32 %v374_v15, 1e-20 }
 0x108   :  { %684 = vrcp.f32 %v396_v46 }
 0x10c   :  { %v383_v5 = vpop.xlane.xlu0 %382 }
 0x10d   :  { %v386_v62 = vpop.xlane.xlu1 %385  ;;  %v399_v19 = vmax.f32 %v383_v5, 1e-20 }
 0x10e   :  { %v400_v0 = vmax.f32 %v386_v62, 1e-20  ;;  %v685_v1 = vpop.eup %684 }
 0x110   :  { %v441_v3 = vpop.f32.mrf.mxu1  ;;  %686 = vrcp.f32 %v400_v0 }
 0x111   :  { %v469_v4 = vmul.f32 %v685_v1, %v441_v3  ;;  %688 = vrcp.f32 %v397_v9 }
 0x113   :  { %485 = vrot.lane.b32.xlu0 %v469_v4, %s733_s21 }
 0x114   :  { %v451_v8 = vpop.f32.mrf.mxu3  ;;  %v392_v17 = vpop.xlane.xlu0 %391 }
 0x115   :  { %v380_v10 = vpop.xlane.xlu2 %379  ;;  %v402_v24 = vmax.f32 %v392_v17, 1e-20  ;;  %v395_v25 = vpop.xlane.xlu1 %394 }
 0x116   :  { %v687_v11 = vpop.eup %686  ;;  %v398_v12 = vmax.f32 %v380_v10, 1e-20  ;;  %v403_v31 = vmax.f32 %v395_v25, 1e-20 }
 0x117   :  { %v473_v13 = vmul.f32 %v687_v11, %v451_v8  ;;  %v689_v20 = vpop.eup %688 }
 0x118   :  { %v443_v16 = vpop.f32.mrf.mxu1  ;;  %690 = vrcp.f32 %v398_v12 }
 0x119   :  { %493 = vrot.lane.b32.xlu1 %v473_v13, %s733_s21  ;;  %v470_v27 = vmul.f32 %v689_v20, %v443_v16  ;;  %692 = vrcp.f32 %v399_v19 }
 0x11a   :  { %694 = vrcp.f32 %v402_v24 }
 0x11b   :  { %696 = vrcp.f32 %v403_v31 }
 0x11c   :  { %v453_v18 = vpop.f32.mrf.mxu3 }
 0x11d   :  { %v389_v32 = vpop.xlane.xlu2 %388  ;;  %v932_v6 = vpop.xlane.xlu1 %159 }
 0x11e   :  { %v691_v28 = vpop.eup %690  ;;  %v401_v37 = vmax.f32 %v389_v32, 1e-20 }
 0x11f   :  { %v693_v14 = vpop.eup %692 }
 0x120   :  { %v695_v38 = vpop.eup %694  ;;  %698 = vrcp.f32 %v401_v37 }
 0x121   :  { %v446_v30 = vpop.f32.mrf.mxu1  ;;  %487 = vrot.lane.b32.xlu1 %v470_v27, %s733_s21  ;;  %v697_v42 = vpop.eup %696 }
 0x122   :  { %v471_v34 = vmul.f32 %v691_v28, %v446_v30  ;;  %v176_v30 = vmax.f32 %v932_v6, 1e-20 }
 0x124   :  { %489 = vrot.lane.b32.xlu2 %v471_v34, %s733_s21  ;;  %v456_v36 = vpop.f32.mrf.mxu3 }
 0x125   :  { %v475_v40 = vmul.f32 %v695_v38, %v456_v36  ;;  %v154_v47 = vpop.xlane.xlu2 %153  ;;  %v169_v52 = vpop.xlane.xlu1 %168 }
 0x126   :  { %v699_v45 = vpop.eup %698  ;;  %v179_v56 = vmax.f32 %v169_v52, 1e-20  ;;  %v174_v0 = vmax.f32 %v154_v47, 1e-20 }
 0x127   :  { %v474_v26 = vmul.f32 %v699_v45, %v453_v18 }
 0x129   :  { %v448_v39 = vpop.f32.mrf.mxu1 }
 0x12a   :  { %v472_v41 = vmul.f32 %v693_v14, %v448_v39 }
 0x12c   :  { %497 = vrot.lane.b32.xlu2 %v475_v40, %s733_s21  ;;  %491 = vrot.lane.b32.xlu0 %v472_v41, %s733_s21  ;;  %v458_v43 = vpop.f32.mrf.mxu3 }
 0x12d   :  { %v476_v44 = vmul.f32 %v697_v42, %v458_v43  ;;  %v163_v49 = vpop.xlane.xlu2 %162  ;;  %v157_v33 = vpop.xlane.xlu0 %156 }
 0x12e   :  { %v248_v35 = vpop.f32.mrf.mxu2  ;;  %v175_v2 = vmax.f32 %v157_v33, 1e-20  ;;  %v177_v23 = vmax.f32 %v163_v49, 1e-20 }
 0x12f   :  { %499 = vrot.lane.b32.xlu1 %v476_v44, %s733_s21 }
 0x130   :  { %v238_v48 = vpop.f32.mrf.mxu0  ;;  %700 = vrcp.f32 %v175_v2 }
 0x131   :  { %702 = vrcp.f32 %v173_v55 }
 0x132   :  { %704 = vrcp.f32 %v179_v56 }
 0x133   :  { %706 = vrcp.f32 %v177_v23 }
 0x134   :  { %495 = vrot.lane.b32.xlu0 %v474_v26, %s733_s21 }
 0x135   :  { %v934_v50 = vpop.xlane.xlu2 %171  ;;  %v939_v22 = vpop.xlane.xlu0 %165 }
 0x136   :  { %v936_v53 = vpop.f32.mrf.mxu2  ;;  %v701_v21 = vpop.eup %700  ;;  %v180_v34 = vmax.f32 %v934_v50, 1e-20  ;;  %v178_v42 = vmax.f32 %v939_v22, 1e-20 }
 0x137   :  { %v703_v15 = vpop.eup %702 }
 0x138   :  { %v240_v7 = vpop.f32.mrf.mxu0  ;;  %v705_v46 = vpop.eup %704  ;;  %v266_v62 = vmul.f32 %v703_v15, %v238_v48 }
 0x139   :  { %v707_v8 = vpop.eup %706 }
 0x13a   :  { %v270_v16 = vmul.f32 %v707_v8, %v248_v35 }
 0x13e   :  { %v253_v60 = vpop.f32.mrf.mxu2 }
 0x13f   :  { %v272_v54 = vmul.f32 %v705_v46, %v253_v60 }
 0x140   :  { %v243_v51 = vpop.f32.mrf.mxu0 }
 0x141   :  { %v268_v57 = vmul.f32 %v701_v21, %v243_v51 }
 0x146   :  { %v255_v49 = vpop.f32.mrf.mxu2 }
 0x148   :  { %v245_v45 = vpop.f32.mrf.mxu0 }
 0x17e   :  { %v490_v58 = vpop.permute.xlu2 %489 }
 0x17f   :  { %v511_v59 = vsel %vm148_vm1, %v268_v57, %v490_v58 }
 0x180   :  { %v527_v29 = vmin.f32 %v511_v59, 0.0  ;;  %vm519_vm2 = vcmp.gt.f32.partialorder %v511_v59, 0.0 }
 0x182   :  { %v537_v61 = vmul.f32 1.442695, %v527_v29 }
 0x184   :  { %708 = vpow2.f32 %v537_v61 }
 0x185   :  { %v486_v63 = vpop.permute.xlu0 %485  ;;  %710 = vrcp.f32 %v174_v0 }
 0x186   :  { %v498_v1 = vpop.permute.xlu2 %497  ;;  %v509_v3 = vsel %vm148_vm1, %v266_v62, %v486_v63 }
 0x187   :  { %v515_v4 = vsel %vm148_vm1, %v272_v54, %v498_v1  ;;  %v525_v5 = vmin.f32 %v509_v3, 0.0  ;;  %vm517_vm3 = vcmp.gt.f32.partialorder %v509_v3, 0.0 }
 0x188   :  { %v531_v9 = vmin.f32 %v515_v4, 0.0  ;;  %vm523_vm4 = vcmp.gt.f32.partialorder %v515_v4, 0.0 }
 0x189   :  { %v533_v10 = vmul.f32 1.442695, %v525_v5 }
 0x18a   :  { %v709_v11 = vpop.eup %708  ;;  %v545_v12 = vmul.f32 1.442695, %v531_v9 }
 0x18b   :  { %v603_v13 = vadd.f32 -1.0, %v709_v11  ;;  %712 = vpow2.f32 %v533_v10  ;;  %v494_v17 = vpop.permute.xlu1 %493  ;;  %v711_v24 = vpop.eup %710 }
 0x18c   :  { %714 = vpow2.f32 %v545_v12  ;;  %v513_v19 = vsel %vm148_vm1, %v270_v16, %v494_v17  ;;  %v267_v32 = vmul.f32 %v711_v24, %v240_v7 }
 0x18d   :  { %v559_v18 = vsel %vm519_vm2, %v511_v59, %v603_v13  ;;  %v529_v20 = vmin.f32 %v513_v19, 0.0  ;;  %vm521_vm5 = vcmp.gt.f32.partialorder %v513_v19, 0.0 }
 0x18e   :  { %567 = vst [vmem:[%s981_s4 + $0x10] sm:$0xff] %v559_v18 }
 0x18f   :  { %v541_v25 = vmul.f32 1.442695, %v529_v20 }
 0x191   :  { %v713_v27 = vpop.eup %712  ;;  %716 = vpow2.f32 %v541_v25 }
 0x192   :  { %v715_v28 = vpop.eup %714  ;;  %v601_v31 = vadd.f32 -1.0, %v713_v27  ;;  %718 = vrcp.f32 %v176_v30 }
 0x193   :  { %v607_v36 = vadd.f32 -1.0, %v715_v28  ;;  %v488_v14 = vpop.permute.xlu1 %487  ;;  %720 = vrcp.f32 %v180_v34 }
 0x194   :  { %v557_v37 = vsel %vm517_vm3, %v509_v3, %v601_v31  ;;  %v510_v39 = vsel %vm148_vm1, %v267_v32, %v488_v14 }
 0x195   :  { %v563_v38 = vsel %vm523_vm4, %v515_v4, %v607_v36  ;;  %565 = vst [vmem:[%s981_s4] sm:$0xff] %v557_v37  ;;  %v526_v40 = vmin.f32 %v510_v39, 0.0  ;;  %vm518_vm6 = vcmp.gt.f32.partialorder %v510_v39, 0.0 }
 0x196   :  { %571 = vst [vmem:[%s981_s4 + $0x30] sm:$0xff] %v563_v38 }
 0x197   :  { %v717_v41 = vpop.eup %716  ;;  %v535_v43 = vmul.f32 1.442695, %v526_v40 }
 0x198   :  { %v605_v44 = vadd.f32 -1.0, %v717_v41  ;;  %v719_v47 = vpop.eup %718 }
 0x199   :  { %722 = vpow2.f32 %v535_v43  ;;  %v721_v48 = vpop.eup %720  ;;  %v269_v6 = vmul.f32 %v719_v47, %v245_v45 }
 0x19a   :  { %v561_v26 = vsel %vm521_vm5, %v513_v19, %v605_v44  ;;  %724 = vrcp.f32 %v178_v42  ;;  %v273_v7 = vmul.f32 %v721_v48, %v255_v49 }
 0x19b   :  { %569 = vst [vmem:[%s981_s4 + $0x20] sm:$0xff] %v561_v26 }
 0x19e   :  { %v492_v33 = vpop.permute.xlu0 %491 }
 0x19f   :  { %v512_v35 = vsel %vm148_vm1, %v269_v6, %v492_v33  ;;  %v723_v2 = vpop.eup %722 }
 0x1a0   :  { %v528_v50 = vmin.f32 %v512_v35, 0.0  ;;  %v602_v52 = vadd.f32 -1.0, %v723_v2  ;;  %v725_v21 = vpop.eup %724  ;;  %vm520_vm7 = vcmp.gt.f32.partialorder %v512_v35, 0.0 }
 0x1a1   :  { %v500_v55 = vpop.permute.xlu1 %499  ;;  %v271_v58 = vmul.f32 %v725_v21, %v936_v53 }
 0x1a2   :  { %v539_v56 = vmul.f32 1.442695, %v528_v50  ;;  %v516_v51 = vsel %vm148_vm1, %v273_v7, %v500_v55  ;;  %v558_v57 = vsel %vm518_vm6, %v510_v39, %v602_v52 }
 0x1a3   :  { %v532_v22 = vmin.f32 %v516_v51, 0.0  ;;  %566 = vst [vmem:[%s981_s4 + $0x8] sm:$0xff] %v558_v57  ;;  %vm524_vm8 = vcmp.gt.f32.partialorder %v516_v51, 0.0 }
 0x1a4   :  { %726 = vpow2.f32 %v539_v56 }
 0x1a5   :  { %v547_v23 = vmul.f32 1.442695, %v532_v22 }
 0x1a6   :  { %v496_v59 = vpop.permute.xlu0 %495 }
 0x1a7   :  { %728 = vpow2.f32 %v547_v23  ;;  %v514_v29 = vsel %vm148_vm1, %v271_v58, %v496_v59 }
 0x1a8   :  { %v530_v60 = vmin.f32 %v514_v29, 0.0  ;;  %vm522_vm1 = vcmp.gt.f32.partialorder %v514_v29, 0.0 }
 0x1aa   :  { %v727_v61 = vpop.eup %726  ;;  %v543_v15 = vmul.f32 1.442695, %v530_v60 }
 0x1ab   :  { %v604_v46 = vadd.f32 -1.0, %v727_v61 }
 0x1ac   :  { %730 = vpow2.f32 %v543_v15 }
 0x1ad   :  { %v729_v62 = vpop.eup %728  ;;  %v560_v54 = vsel %vm520_vm7, %v512_v35, %v604_v46 }
 0x1ae   :  { %568 = vst [vmem:[%s981_s4 + $0x18] sm:$0xff] %v560_v54  ;;  %v608_v63 = vadd.f32 -1.0, %v729_v62 }
 0x1b0   :  { %v564_v0 = vsel %vm524_vm8, %v516_v51, %v608_v63 }
 0x1b1   :  { %572 = vst [vmem:[%s981_s4 + $0x38] sm:$0xff] %v564_v0 }
 0x1b2   :  { %v731_v53 = vpop.eup %730 }
 0x1b3   :  { %v606_v1 = vadd.f32 -1.0, %v731_v53 }
 0x1b5   :  { %v562_v3 = vsel %vm522_vm1, %v514_v29, %v606_v1 }
 0x1b6   :  { %570 = vst [vmem:[%s981_s4 + $0x28] sm:$0xff] %v562_v3 }

// kernel: gat_forward.6
= control target key start
LH: loop header
LB: loop body
LE: loop exit
PB: predicated region body
PF: predicated region fallthrough
CT: control target
= control target key end

     0   :  { %vm231_vm0 = vcmask 31744   ;;  %vm129_vm1 = vcmask 519168   ;;  %s505_s1 = inlined_call_operand.vmem [shape: bf16[128,64], index: 1, kind: input, shape index: {}]   ;;  %s506_s2 = inlined_call_operand.vmem [shape: bf16[128,4], index: 2, kind: input, shape index: {}]   ;;  %s507_s0 = inlined_call_operand.vmem [shape: f32[64,128], index: 0, kind: input, shape index: {}]   ;;  %s508_s4 = inlined_call_operand.vmem [shape: f32[64,4], index: 4, kind: output, shape index: {1}]   ;;  %s509_s3 = inlined_call_operand.vmem [shape: bf16[64,64], index: 3, kind: output, shape index: {0}]  }
   0x1   :  { %v319_v0 = vld [vmem:[%s505_s1 + $0x38] sm:$0xff]  ;;  %v318_v2 = vld [vmem:[%s505_s1 + $0x30] sm:$0xff]  ;;  %v317_v4 = vld [vmem:[%s505_s1 + $0x28] sm:$0xff] }
   0x2   :  { %v327_v1 = vld [vmem:[%s506_s2 + $0x38] sm:$0xff]  ;;  %92 = vmatpush.bf16.msra.mxu0 %v319_v0  ;;  %328 = vmatpush.bf16.msra.mxu2 %v319_v0  ;;  %v326_v3 = vld [vmem:[%s506_s2 + $0x30] sm:$0xff]  ;;  %v325_v5 = vld [vmem:[%s506_s2 + $0x28] sm:$0xff] }
   0x3   :  { %202 = vmatpush.bf16.msra.mxu1 %v327_v1  ;;  %336 = vmatpush.bf16.msra.mxu3 %v327_v1  ;;  %v316_v6 = vld [vmem:[%s505_s1 + $0x20] sm:$0xff]  ;;  %v315_v8 = vld [vmem:[%s505_s1 + $0x18] sm:$0xff]  ;;  %v314_v10 = vld [vmem:[%s505_s1 + $0x10] sm:$0xff] }
   0x4   :  { %v324_v7 = vld [vmem:[%s506_s2 + $0x20] sm:$0xff]  ;;  %v323_v9 = vld [vmem:[%s506_s2 + $0x18] sm:$0xff]  ;;  %v322_v11 = vld [vmem:[%s506_s2 + $0x10] sm:$0xff] }
   0x5   :  { %v313_v12 = vld [vmem:[%s505_s1 + $0x8] sm:$0xff]  ;;  %v312_v14 = vld [vmem:[%s505_s1] sm:$0xff]  ;;  %v18_v22 = vld [vmem:[%s507_s0 + $0x10] sm:$0xff] }
   0x6   :  { %93 = vmatpush.bf16.msra.mxu0 %v318_v2  ;;  %329 = vmatpush.bf16.msra.mxu2 %v318_v2  ;;  %v321_v13 = vld [vmem:[%s506_s2 + $0x8] sm:$0xff]  ;;  %v16_v15 = vld [vmem:[%s507_s0] sm:$0xff]  ;;  %v19_v23 = vld [vmem:[%s507_s0 + $0x18] sm:$0xff] }
   0x7   :  { %203 = vmatpush.bf16.msra.mxu1 %v326_v3  ;;  %337 = vmatpush.bf16.msra.mxu3 %v326_v3  ;;  %v17_v16 = vld [vmem:[%s507_s0 + $0x8] sm:$0xff]  ;;  %v20_v17 = vld [vmem:[%s507_s0 + $0x20] sm:$0xff]  ;;  %v22_v24 = vld [vmem:[%s507_s0 + $0x30] sm:$0xff]  ;;  %v25_v26 = vpack.c.bf16 %v19_v23, %v18_v22 }
   0x8   :  { %v21_v18 = vld [vmem:[%s507_s0 + $0x28] sm:$0xff]  ;;  %v320_v19 = vld [vmem:[%s506_s2] sm:$0xff]  ;;  %v24_v20 = vpack.c.bf16 %v17_v16, %v16_v15  ;;  %v23_v25 = vld [vmem:[%s507_s0 + $0x38] sm:$0xff] }
   0x9   :  { %v26_v21 = vpack.c.bf16 %v21_v18, %v20_v17  ;;  %v27_v27 = vpack.c.bf16 %v23_v25, %v22_v24 }
   0xa   :  { %94 = vmatpush.bf16.msra.mxu0 %v317_v4  ;;  %330 = vmatpush.bf16.msra.mxu2 %v317_v4 }
   0xb   :  { %204 = vmatpush.bf16.msra.mxu1 %v325_v5  ;;  %338 = vmatpush.bf16.msra.mxu3 %v325_v5 }
   0xe   :  { %95 = vmatpush.bf16.msra.mxu0 %v316_v6  ;;  %331 = vmatpush.bf16.msra.mxu2 %v316_v6 }
   0xf   :  { %205 = vmatpush.bf16.msra.mxu1 %v324_v7  ;;  %339 = vmatpush.bf16.msra.mxu3 %v324_v7 }
  0x12   :  { %96 = vmatpush.bf16.msra.mxu0 %v315_v8  ;;  %332 = vmatpush.bf16.msra.mxu2 %v315_v8 }
  0x13   :  { %206 = vmatpush.bf16.msra.mxu1 %v323_v9  ;;  %340 = vmatpush.bf16.msra.mxu3 %v323_v9 }
  0x16   :  { %97 = vmatpush.bf16.msra.mxu0 %v314_v10  ;;  %333 = vmatpush.bf16.msra.mxu2 %v314_v10 }
  0x17   :  { %207 = vmatpush.bf16.msra.mxu1 %v322_v11  ;;  %341 = vmatpush.bf16.msra.mxu3 %v322_v11 }
  0x1a   :  { %98 = vmatpush.bf16.msra.mxu0 %v313_v12  ;;  %334 = vmatpush.bf16.msra.mxu2 %v313_v12 }
  0x1b   :  { %208 = vmatpush.bf16.msra.mxu1 %v321_v13  ;;  %342 = vmatpush.bf16.msra.mxu3 %v321_v13 }
  0x1e   :  { %99 = vmatpush.bf16.msra.mxu0 %v312_v14  ;;  %335 = vmatpush.bf16.msra.mxu2 %v312_v14 }
  0x1f   :  { %209 = vmatpush.bf16.msra.mxu1 %v320_v19  ;;  %343 = vmatpush.bf16.msra.mxu3 %v320_v19 }
  0x21   :  { %100 = vmatmul.bf16.vlgmr.msra.gmra.mxu0 %v24_v20  ;;  %110 = vmatmul.bf16.vlgmr.msra.gmra.mxu2 %v26_v21 }
  0x22   :  { %210 = vmatmul.bf16.vlgmr.msra.gmra.mxu1 %v24_v20  ;;  %220 = vmatmul.bf16.vlgmr.msra.gmra.mxu3 %v26_v21 }
  0x31   :  { %105 = vmatmul.bf16.gmra.mxu0 %v25_v26  ;;  %115 = vmatmul.bf16.gmra.mxu2 %v27_v27 }
  0x32   :  { %215 = vmatmul.bf16.gmra.mxu1 %v25_v26  ;;  %225 = vmatmul.bf16.gmra.mxu3 %v27_v27 }
  0x9e   :  { %v101_v28 = vpop.f32.mrf.mxu0 }
  0x9f   :  { %v121_v29 = vpack.c.bf16 %v101_v28, %v101_v28  ;;  %v211_v30 = vpop.f32.mrf.mxu1 }
  0xa0   :  { %232 = vst.msk [vmem:[%s508_s4] sm:$0xff] %vm231_vm0, %v211_v30 }
  0xa1   :  { %130 = vst.msk [vmem:[%s509_s3] sm:$0xf] %vm129_vm1, %v121_v29 }
  0xa4   :  { %v111_v31 = vpop.f32.mrf.mxu2 }
  0xa5   :  { %v125_v32 = vpack.c.bf16 %v111_v31, %v111_v31  ;;  %v221_v33 = vpop.f32.mrf.mxu3 }
  0xa6   :  { %236 = vst.msk [vmem:[%s508_s4 + $0x20] sm:$0xff] %vm231_vm0, %v221_v33  ;;  %v103_v34 = vpop.f32.mrf.mxu0 }
  0xa7   :  { %134 = vst.msk [vmem:[%s509_s3 + $0x10] sm:$0xf] %vm129_vm1, %v125_v32  ;;  %v122_v35 = vpack.c.bf16 %v103_v34, %v103_v34  ;;  %v213_v36 = vpop.f32.mrf.mxu1 }
  0xa8   :  { %233 = vst.msk [vmem:[%s508_s4 + $0x8] sm:$0xff] %vm231_vm0, %v213_v36 }
  0xa9   :  { %131 = vst.msk [vmem:[%s509_s3 + $0x4] sm:$0xf] %vm129_vm1, %v122_v35 }
  0xac   :  { %v113_v37 = vpop.f32.mrf.mxu2 }
  0xad   :  { %v126_v38 = vpack.c.bf16 %v113_v37, %v113_v37  ;;  %v223_v39 = vpop.f32.mrf.mxu3 }
  0xae   :  { %237 = vst.msk [vmem:[%s508_s4 + $0x28] sm:$0xff] %vm231_vm0, %v223_v39  ;;  %v106_v40 = vpop.f32.mrf.mxu0 }
  0xaf   :  { %135 = vst.msk [vmem:[%s509_s3 + $0x14] sm:$0xf] %vm129_vm1, %v126_v38  ;;  %v123_v41 = vpack.c.bf16 %v106_v40, %v106_v40  ;;  %v216_v42 = vpop.f32.mrf.mxu1 }
  0xb0   :  { %234 = vst.msk [vmem:[%s508_s4 + $0x10] sm:$0xff] %vm231_vm0, %v216_v42 }
  0xb1   :  { %132 = vst.msk [vmem:[%s509_s3 + $0x8] sm:$0xf] %vm129_vm1, %v123_v41 }
  0xb4   :  { %v116_v43 = vpop.f32.mrf.mxu2 }
  0xb5   :  { %v127_v44 = vpack.c.bf16 %v116_v43, %v116_v43  ;;  %v226_v45 = vpop.f32.mrf.mxu3 }
  0xb6   :  { %238 = vst.msk [vmem:[%s508_s4 + $0x30] sm:$0xff] %vm231_vm0, %v226_v45  ;;  %v108_v46 = vpop.f32.mrf.mxu0 }
  0xb7   :  { %136 = vst.msk [vmem:[%s509_s3 + $0x18] sm:$0xf] %vm129_vm1, %v127_v44  ;;  %v124_v47 = vpack.c.bf16 %v108_v46, %v108_v46  ;;  %v218_v48 = vpop.f32.mrf.mxu1 }
  0xb8   :  { %235 = vst.msk [vmem:[%s508_s4 + $0x18] sm:$0xff] %vm231_vm0, %v218_v48 }
  0xb9   :  { %133 = vst.msk [vmem:[%s509_s3 + $0xc] sm:$0xf] %vm129_vm1, %v124_v47 }
  0xbc   :  { %v118_v49 = vpop.f32.mrf.mxu2 }
  0xbd   :  { %v128_v50 = vpack.c.bf16 %v118_v49, %v118_v49  ;;  %v228_v51 = vpop.f32.mrf.mxu3 }
  0xbe   :  { %239 = vst.msk [vmem:[%s508_s4 + $0x38] sm:$0xff] %vm231_vm0, %v228_v51 }
  0xbf   :  { %137 = vst.msk [vmem:[%s509_s3 + $0x1c] sm:$0xf] %vm129_vm1, %v128_v50 }

// kernel: gat_forward.7
= control target key start
LH: loop header
LB: loop body
LE: loop exit
PB: predicated region body
PF: predicated region fallthrough
CT: control target
= control target key end

     0   :  { %v662_v0 = vmov 1   ;;  %s663_s21 = smov 96   ;;  %v664_v11 = vmov 0   ;;  %vm148_vm8 = vcmask 523264   ;;  %s904_s0 = inlined_call_operand.vmem [shape: f32[64,2], index: 0, kind: input, shape index: {}]   ;;  %s905_s3 = inlined_call_operand.vmem [shape: bf16[64,64], index: 3, kind: input, shape index: {}]   ;;  %s906_s1 = inlined_call_operand.vmem [shape: f32[2,64], index: 1, kind: input, shape index: {}]   ;;  %s907_s2 = inlined_call_operand.vmem [shape: bf16[64,64], index: 2, kind: input, shape index: {}]   ;;  %s908_s4 = inlined_call_operand.vmem [shape: f32[64,64], index: 4, kind: output, shape index: {}]  }
   0x1   :  { %589 = vset.pattern.permute.xlu0 %v662_v0  ;;  %v38_v1 = vld [vmem:[%s904_s0 + $0x20] sm:$0xff]  ;;  %v557_v2 = vld [vmem:[%s905_s3 + $0x18] sm:$0xff]  ;;  %591 = vset.pattern.permute.xlu2 %v662_v0  ;;  %v35_v3 = vld [vmem:[%s904_s0 + $0x8] sm:$0xff] }
   0x2   :  { %292 = vperm.xlu0 %589, %v38_v1   ;;  %590 = vset.pattern.permute.xlu1 %v662_v0  ;;  %v556_v4 = vld [vmem:[%s905_s3 + $0x10] sm:$0xff]  ;;  %v39_v5 = vld [vmem:[%s904_s0 + $0x28] sm:$0xff]  ;;  %v34_v6 = vld [vmem:[%s904_s0] sm:$0xff] }
   0x3   :  { %414 = vrot.lane.b32.xlu1 %v557_v2, %s663_s21  ;;  %280 = vperm.xlu2 %591, %v35_v3   ;;  %v555_v7 = vld [vmem:[%s905_s3 + $0x8] sm:$0xff]  ;;  %v554_v8 = vld [vmem:[%s905_s3] sm:$0xff]  ;;  %v40_v9 = vld [vmem:[%s904_s0 + $0x30] sm:$0xff] }
   0x4   :  { %577 = vmatpush.bf16.msra.mxu2 %v557_v2  ;;  %233 = vmatpush.bf16.msra.mxu0 %v557_v2  ;;  %v41_v10 = vld [vmem:[%s904_s0 + $0x38] sm:$0xff]  ;;  %v36_v12 = vld [vmem:[%s904_s0 + $0x10] sm:$0xff]  ;;  %v730_v17 = vld [vmem:[%s906_s1 + $0x1] ss:$0 sm:$0xff] }
   0x5   :  { %v37_v13 = vld [vmem:[%s904_s0 + $0x18] sm:$0xff]  ;;  %v737_v28 = vld [vmem:[%s906_s1] ss:$0 sm:$0xff]  ;;  %v747_v49 = vld [vmem:[%s907_s2 + $0x10] sm:$0xff]  }
   0x6   :  { %v568_v59 = vunpack.c.l.bf16 %v747_v49  ;;  %v754_v60 = vld [vmem:[%s907_s2] sm:$0xff]  }
   0x7   :  { %v560_v2 = vunpack.c.l.bf16 %v754_v60 }
   0x8   :  { %578 = vmatpush.bf16.msra.mxu2 %v556_v4  ;;  %234 = vmatpush.bf16.msra.mxu0 %v556_v4 }
   0xa   :  { %296 = vperm.xlu0 %589, %v39_v5  }
   0xb   :  { %276 = vperm.xlu1 %590, %v34_v6   ;;  %412 = vrot.lane.b32.xlu2 %v556_v4, %s663_s21 }
   0xc   :  { %579 = vmatpush.bf16.msra.mxu2 %v555_v7  ;;  %235 = vmatpush.bf16.msra.mxu0 %v555_v7 }
  0x10   :  { %580 = vmatpush.bf16.msra.mxu2 %v554_v8  ;;  %236 = vmatpush.bf16.msra.mxu0 %v554_v8 }
  0x12   :  { %410 = vrot.lane.b32.xlu0 %v555_v7, %s663_s21 }
  0x13   :  { %300 = vperm.xlu1 %590, %v40_v9   ;;  %304 = vperm.xlu2 %591, %v41_v10  }
  0x14   :  { %592 = vset.pattern.permute.xlu0 %v664_v11 }
  0x1a   :  { %408 = vrot.lane.b32.xlu0 %v554_v8, %s663_s21 }
  0x1b   :  { %284 = vperm.xlu1 %590, %v36_v12   ;;  %288 = vperm.xlu2 %591, %v37_v13  }
  0x22   :  { %65 = vperm.xlu0 %592, %v38_v1  }
  0x23   :  { %593 = vset.pattern.permute.xlu1 %v664_v11  ;;  %594 = vset.pattern.permute.xlu2 %v664_v11 }
  0x24   :  { %70 = vperm.xlu1 %593, %v39_v5   ;;  %45 = vperm.xlu2 %594, %v34_v6  }
  0x2a   :  { %80 = vperm.xlu0 %592, %v41_v10  }
  0x2c   :  { %50 = vperm.xlu1 %593, %v35_v3   ;;  %75 = vperm.xlu2 %594, %v40_v9   ;;  %v561_v3 = vunpack.c.h.bf16 %v754_v60 }
  0x32   :  { %595 = vset.pattern.permute.xlu0 %v662_v0  ;;  %v569_v0 = vunpack.c.h.bf16 %v747_v49 }
  0x34   :  { %55 = vperm.xlu1 %593, %v36_v12   ;;  %60 = vperm.xlu2 %594, %v37_v13  }
  0x5d   :  { %v281_v14 = vpop.permute.xlu2 %280 }
  0x5e   :  { %v309_v18 = vadd.f32 %v730_v17, %v281_v14 }
  0x60   :  { %v325_v22 = vmul.f32 0.2, %v309_v18  ;;  %vm317_vm0 = vcmp.gt.f32.partialorder %v309_v18, 0.0 }
  0x62   :  { %v333_v26 = vsel %vm317_vm0, %v309_v18, %v325_v22 }
  0x63   :  { %v341_v30 = vsub.f32 0.0, %v333_v26 }
  0x65   :  { %v413_v15 = vpop.permute.xlu2 %412  ;;  %v350_v41 = vmul.f32 1.442695, %v341_v30 }
  0x6d   :  { %v305_v16 = vpop.permute.xlu2 %304 }
  0x6e   :  { %v315_v36 = vadd.f32 %v730_v17, %v305_v16 }
  0x70   :  { %v331_v46 = vmul.f32 0.2, %v315_v36  ;;  %vm323_vm5 = vcmp.gt.f32.partialorder %v315_v36, 0.0 }
  0x72   :  { %v339_v58 = vsel %vm323_vm5, %v315_v36, %v331_v46 }
  0x73   :  { %v347_v5 = vsub.f32 0.0, %v339_v58 }
  0x74   :  { %v293_v19 = vpop.permute.xlu0 %292 }
  0x75   :  { %v312_v20 = vadd.f32 %v730_v17, %v293_v19  ;;  %v415_v21 = vpop.permute.xlu1 %414  ;;  %v289_v23 = vpop.permute.xlu2 %288 }
  0x76   :  { %436 = vmatpush.bf16.msra.mxu1 %v415_v21  ;;  %581 = vmatpush.bf16.msra.mxu3 %v415_v21  ;;  %v311_v39 = vadd.f32 %v730_v17, %v289_v23 }
  0x77   :  { %vm320_vm1 = vcmp.gt.f32.partialorder %v312_v20, 0.0  ;;  %v328_v24 = vmul.f32 0.2, %v312_v20 }
  0x78   :  { %v327_v51 = vmul.f32 0.2, %v311_v39  ;;  %vm319_vm6 = vcmp.gt.f32.partialorder %v311_v39, 0.0 }
  0x79   :  { %v336_v25 = vsel %vm320_vm1, %v312_v20, %v328_v24  ;;  %v362_v20 = vmul.f32 1.442695, %v347_v5  ;;  %vm509_vm1 = vcmask 261120  }
  0x7a   :  { %v344_v27 = vsub.f32 0.0, %v336_v25  ;;  %582 = vmatpush.bf16.msra.mxu3 %v413_v15  ;;  %437 = vmatpush.bf16.msra.mxu1 %v413_v15  ;;  %v335_v62 = vsel %vm319_vm6, %v311_v39, %v327_v51 }
  0x7b   :  { %v343_v6 = vsub.f32 0.0, %v335_v62 }
  0x7c   :  { %v297_v29 = vpop.permute.xlu0 %296  ;;  %v356_v33 = vmul.f32 1.442695, %v344_v27 }
  0x7d   :  { %v313_v31 = vadd.f32 %v730_v17, %v297_v29  ;;  %v277_v32 = vpop.permute.xlu1 %276  ;;  %v354_v21 = vmul.f32 1.442695, %v343_v6 }
  0x7e   :  { %v308_v34 = vadd.f32 %v730_v17, %v277_v32  ;;  %v46_v35 = vpop.permute.xlu2 %45  ;;  %598 = vpow2.f32 %v356_v33  ;;  %v783_v33 = vld [vmem:[%s907_s2 + $0x18] sm:$0xff]  }
  0x7f   :  { %vm321_vm2 = vcmp.gt.f32.partialorder %v313_v31, 0.0  ;;  %v329_v37 = vmul.f32 0.2, %v313_v31  ;;  %v84_v38 = vadd.f32 %v737_v28, %v46_v35  ;;  %600 = vpow2.f32 %v350_v41 }
  0x80   :  { %vm316_vm3 = vcmp.gt.f32.partialorder %v308_v34, 0.0  ;;  %v324_v40 = vmul.f32 0.2, %v308_v34 }
  0x81   :  { %v337_v42 = vsel %vm321_vm2, %v313_v31, %v329_v37  ;;  %vm92_vm4 = vcmp.gt.f32.partialorder %v84_v38, 0.0  ;;  %v100_v43 = vmul.f32 0.2, %v84_v38  ;;  %v572_v37 = vunpack.c.l.bf16 %v783_v33 }
  0x82   :  { %v345_v44 = vsub.f32 0.0, %v337_v42  ;;  %v332_v45 = vsel %vm316_vm3, %v308_v34, %v324_v40  ;;  %v788_v34 = vld [vmem:[%s907_s2 + $0x8] sm:$0xff]   ;;  %v573_v42 = vunpack.c.h.bf16 %v783_v33  ;;  %s665_s2 = smov 32  }
  0x83   :  { %v340_v47 = vsub.f32 0.0, %v332_v45  ;;  %v108_v48 = vsel %vm92_vm4, %v84_v38, %v100_v43  ;;  %v565_v43 = vunpack.c.h.bf16 %v788_v34  ;;  %v564_v51 = vunpack.c.l.bf16 %v788_v34 }
  0x84   :  { %v358_v50 = vmul.f32 1.442695, %v345_v44  ;;  %v411_v52 = vpop.permute.xlu0 %410  ;;  %v116_v53 = vsub.f32 0.0, %v108_v48  ;;  %v599_v61 = vpop.eup %598 }
  0x85   :  { %v348_v54 = vmul.f32 1.442695, %v340_v47  ;;  %v301_v55 = vpop.permute.xlu1 %300  ;;  %583 = vmatpush.bf16.msra.mxu3 %v411_v52  ;;  %438 = vmatpush.bf16.msra.mxu1 %v411_v52  ;;  %v601_v4 = vpop.eup %600  ;;  %v761_v8 = vmul.f32 %v599_v61, %v568_v59 }
  0x86   :  { %602 = vpow2.f32 %v358_v50  ;;  %v124_v56 = vmul.f32 1.442695, %v116_v53  ;;  %v314_v57 = vadd.f32 %v730_v17, %v301_v55  ;;  %v365_v19 = vmul.f32 %v601_v4, %v561_v3  ;;  %v76_v35 = vpop.permute.xlu2 %75 }
  0x87   :  { %604 = vpow2.f32 %v348_v54  ;;  %v90_v46 = vadd.f32 %v737_v28, %v76_v35 }
  0x88   :  { %606 = vpow2.f32 %v124_v56  ;;  %vm322_vm7 = vcmp.gt.f32.partialorder %v314_v57, 0.0  ;;  %v330_v63 = vmul.f32 0.2, %v314_v57  ;;  %v375_v41 = vsel %vm148_vm8, %v365_v19, 0.0 }
  0x89   :  { %v106_v58 = vmul.f32 0.2, %v90_v46  ;;  %vm98_vm12 = vcmp.gt.f32.partialorder %v90_v46, 0.0 }
  0x8a   :  { %v338_v1 = vsel %vm322_vm7, %v314_v57, %v330_v63 }
  0x8b   :  { %v346_v7 = vsub.f32 0.0, %v338_v1 }
  0x8c   :  { %v603_v9 = vpop.eup %602  ;;  %v409_v10 = vpop.permute.xlu0 %408 }
  0x8d   :  { %v605_v11 = vpop.eup %604  ;;  %584 = vmatpush.bf16.msra.mxu3 %v409_v10  ;;  %v285_v12 = vpop.permute.xlu1 %284  ;;  %439 = vmatpush.bf16.msra.mxu1 %v409_v10  ;;  %v765_v13 = vmul.f32 %v603_v9, %v569_v0  ;;  %v360_v15 = vmul.f32 1.442695, %v346_v7  ;;  %v384_v10 = vsel %vm148_vm8, %v761_v8, 0.0 }
  0x8e   :  { %v607_v14 = vpop.eup %606  ;;  %v310_v16 = vadd.f32 %v730_v17, %v285_v12  ;;  %v364_v18 = vmul.f32 %v605_v11, %v560_v2  ;;  %v61_v9 = vpop.permute.xlu2 %60 }
  0x8f   :  { %v406_v22 = vpack.c.bf16 %v765_v13, %v761_v8  ;;  %v772_v23 = vmul.f32 %v607_v14, %v560_v2  ;;  %608 = vpow2.f32 %v360_v15  ;;  %v114_v14 = vsel %vm98_vm12, %v90_v46, %v106_v58 }
  0x90   :  { %vm318_vm9 = vcmp.gt.f32.partialorder %v310_v16, 0.0  ;;  %v326_v24 = vmul.f32 0.2, %v310_v16  ;;  %v372_v25 = vsel %vm148_vm8, %v364_v18, 0.0  ;;  %v404_v26 = vpack.c.bf16 %v365_v19, %v364_v18 }
  0x91   :  { %552 = vmatmul.msk.bf16.vlgmr.msra.gmra.mxu3 %vm148_vm8, %v406_v22  ;;  %373 = vadd.xlane.f32.xlu2 %v372_v25  ;;  %v149_v17 = vsel %vm148_vm8, %v772_v23, 0.0  ;;  %610 = vpow2.f32 %v362_v20  ;;  %v87_v19 = vadd.f32 %v737_v28, %v61_v9  ;;  %v122_v8 = vsub.f32 0.0, %v114_v14 }
  0x92   :  { %v334_v27 = vsel %vm318_vm9, %v310_v16, %v326_v24  ;;  %550 = vmatmul.msk.bf16.vlgmr.msra.gmra.mxu1 %vm148_vm8, %v404_v26  ;;  %150 = vadd.xlane.f32.xlu0 %v149_v17  ;;  %612 = vpow2.f32 %v354_v21 }
  0x93   :  { %v342_v29 = vsub.f32 0.0, %v334_v27  ;;  %vm95_vm15 = vcmp.gt.f32.partialorder %v87_v19, 0.0 }
  0x94   :  { %v66_v30 = vpop.permute.xlu0 %65 }
  0x95   :  { %v352_v31 = vmul.f32 1.442695, %v342_v29  ;;  %v88_v32 = vadd.f32 %v737_v28, %v66_v30  ;;  %v609_v40 = vpop.eup %608  ;;  %v103_v29 = vmul.f32 0.2, %v87_v19 }
  0x96   :  { %v71_v36 = vpop.permute.xlu1 %70  ;;  %v799_v53 = vmul.f32 %v609_v40, %v572_v37 }
  0x97   :  { %614 = vpow2.f32 %v352_v31  ;;  %vm96_vm10 = vcmp.gt.f32.partialorder %v88_v32, 0.0  ;;  %v104_v38 = vmul.f32 0.2, %v88_v32  ;;  %v89_v39 = vadd.f32 %v737_v28, %v71_v36  ;;  %v611_v44 = vpop.eup %610 }
  0x98   :  { %v613_v48 = vpop.eup %612  ;;  %v371_v62 = vmul.f32 %v611_v44, %v573_v42 }
  0x99   :  { %v112_v45 = vsel %vm96_vm10, %v88_v32, %v104_v38  ;;  %vm97_vm11 = vcmp.gt.f32.partialorder %v89_v39, 0.0  ;;  %v105_v47 = vmul.f32 0.2, %v89_v39  ;;  %376 = vadd.xlane.f32.xlu2 %v375_v41  ;;  %v806_v63 = vmul.f32 %v613_v48, %v565_v43 }
  0x9a   :  { %v120_v50 = vsub.f32 0.0, %v112_v45  ;;  %v407_v7 = vpack.c.bf16 %v371_v62, %v799_v53  ;;  %v136_v32 = vmul.f32 1.442695, %v122_v8  ;;  %v393_v35 = vsel %vm148_vm8, %v371_v62, 0.0 }
  0x9b   :  { %v113_v52 = vsel %vm97_vm11, %v89_v39, %v105_v47  ;;  %v111_v39 = vsel %vm95_vm15, %v87_v19, %v103_v29 }
  0x9c   :  { %v132_v54 = vmul.f32 1.442695, %v120_v50  ;;  %v121_v55 = vsub.f32 0.0, %v113_v52  ;;  %v81_v56 = vpop.permute.xlu0 %80 }
  0x9d   :  { %v615_v57 = vpop.eup %614  ;;  %v91_v61 = vadd.f32 %v737_v28, %v81_v56 }
  0x9e   :  { %616 = vpow2.f32 %v132_v54  ;;  %v134_v1 = vmul.f32 1.442695, %v121_v55  ;;  %v51_v2 = vpop.permute.xlu1 %50  ;;  %v366_v4 = vmul.f32 %v615_v57, %v564_v51 }
  0x9f   :  { %vm99_vm13 = vcmp.gt.f32.partialorder %v91_v61, 0.0  ;;  %v107_v5 = vmul.f32 0.2, %v91_v61  ;;  %v85_v6 = vadd.f32 %v737_v28, %v51_v2 }
  0xa0   :  { %618 = vpow2.f32 %v134_v1  ;;  %v378_v11 = vsel %vm148_vm8, %v366_v4, 0.0  ;;  %v405_v12 = vpack.c.bf16 %v806_v63, %v366_v4 }
  0xa1   :  { %v115_v15 = vsel %vm99_vm13, %v91_v61, %v107_v5  ;;  %vm93_vm14 = vcmp.gt.f32.partialorder %v85_v6, 0.0  ;;  %v101_v16 = vmul.f32 0.2, %v85_v6  ;;  %553 = vmatmul.msk.bf16.gmra.mxu3 %vm148_vm8, %v407_v7  ;;  %385 = vadd.xlane.f32.xlu2 %v384_v10 }
  0xa2   :  { %379 = vadd.xlane.f32.xlu0 %v378_v11  ;;  %551 = vmatmul.msk.bf16.gmra.mxu1 %vm148_vm8, %v405_v12  ;;  %v123_v18 = vsub.f32 0.0, %v115_v15 }
  0xa3   :  { %v109_v20 = vsel %vm93_vm14, %v85_v6, %v101_v16 }
  0xa4   :  { %v617_v21 = vpop.eup %616  ;;  %v117_v22 = vsub.f32 0.0, %v109_v20  ;;  %v138_v27 = vmul.f32 1.442695, %v123_v18 }
  0xa5   :  { %v144_v24 = vmul.f32 %v617_v21, %v568_v59  ;;  %v387_v59 = vsel %vm148_vm8, %v765_v13, 0.0 }
  0xa6   :  { %v619_v25 = vpop.eup %618  ;;  %v126_v26 = vmul.f32 1.442695, %v117_v22  ;;  %v56_v17 = vpop.permute.xlu1 %55 }
  0xa7   :  { %v86_v30 = vadd.f32 %v737_v28, %v56_v17  ;;  %v145_v31 = vmul.f32 %v619_v25, %v569_v0  ;;  %v119_v0 = vsub.f32 0.0, %v111_v39  ;;  %v161_v44 = vsel %vm148_vm8, %v144_v24, 0.0 }
  0xa8   :  { %620 = vpow2.f32 %v126_v26 }
  0xa9   :  { %vm94_vm0 = vcmp.gt.f32.partialorder %v86_v30, 0.0  ;;  %v102_v36 = vmul.f32 0.2, %v86_v30  ;;  %394 = vadd.xlane.f32.xlu2 %v393_v35  ;;  %v183_v38 = vpack.c.bf16 %v145_v31, %v144_v24  ;;  %622 = vpow2.f32 %v138_v27 }
  0xaa   :  { %388 = vadd.xlane.f32.xlu0 %v387_v59  ;;  %624 = vpow2.f32 %v136_v32  ;;  %v130_v50 = vmul.f32 1.442695, %v119_v0 }
  0xab   :  { %v110_v40 = vsel %vm94_vm0, %v86_v30, %v102_v36  ;;  %548 = vmatmul.msk.bf16.vlgmr.msra.gmra.mxu2 %vm148_vm8, %v183_v38 }
  0xac   :  { %v118_v28 = vsub.f32 0.0, %v110_v40 }
  0xae   :  { %v621_v49 = vpop.eup %620  ;;  %v128_v41 = vmul.f32 1.442695, %v118_v28 }
  0xaf   :  { %v141_v45 = vmul.f32 %v621_v49, %v561_v3  ;;  %v623_v46 = vpop.eup %622 }
  0xb0   :  { %626 = vpow2.f32 %v128_v41  ;;  %v625_v48 = vpop.eup %624  ;;  %v147_v52 = vmul.f32 %v623_v46, %v573_v42  ;;  %v390_v42 = vsel %vm148_vm8, %v799_v53, 0.0 }
  0xb1   :  { %162 = vadd.xlane.f32.xlu2 %v161_v44  ;;  %v152_v13 = vsel %vm148_vm8, %v141_v45, 0.0  ;;  %v181_v47 = vpack.c.bf16 %v141_v45, %v772_v23  ;;  %v146_v54 = vmul.f32 %v625_v48, %v572_v37  ;;  %628 = vpow2.f32 %v130_v50 }
  0xb2   :  { %153 = vadd.xlane.f32.xlu1 %v152_v13  ;;  %v170_v3 = vsel %vm148_vm8, %v147_v52, 0.0  ;;  %v381_v23 = vsel %vm148_vm8, %v806_v63, 0.0 }
  0xb3   :  { %546 = vmatmul.msk.bf16.vlgmr.msra.gmra.mxu0 %vm148_vm8, %v181_v47  ;;  %v184_v57 = vpack.c.bf16 %v147_v52, %v146_v54  ;;  %v167_v62 = vsel %vm148_vm8, %v146_v54, 0.0 }
  0xb6   :  { %v627_v60 = vpop.eup %626 }
  0xb7   :  { %v142_v55 = vmul.f32 %v627_v60, %v564_v51  ;;  %v629_v33 = vpop.eup %628  ;;  %v164_v51 = vsel %vm148_vm8, %v145_v31, 0.0 }
  0xb8   :  { %v143_v37 = vmul.f32 %v629_v33, %v565_v43 }
  0xb9   :  { %v155_v56 = vsel %vm148_vm8, %v142_v55, 0.0  ;;  %171 = vadd.xlane.f32.xlu2 %v170_v3 }
  0xba   :  { %382 = vadd.xlane.f32.xlu1 %v381_v23  ;;  %156 = vadd.xlane.f32.xlu0 %v155_v56  ;;  %v182_v58 = vpack.c.bf16 %v143_v37, %v142_v55  ;;  %v158_v61 = vsel %vm148_vm8, %v143_v37, 0.0 }
  0xbb   :  { %549 = vmatmul.msk.bf16.gmra.mxu2 %vm148_vm8, %v184_v57 }
  0xc2   :  { %391 = vadd.xlane.f32.xlu1 %v390_v42  ;;  %165 = vadd.xlane.f32.xlu0 %v164_v51 }
  0xc3   :  { %547 = vmatmul.msk.bf16.gmra.mxu0 %vm148_vm8, %v182_v58 }
  0xca   :  { %159 = vadd.xlane.f32.xlu1 %v158_v61 }
  0xd2   :  { %168 = vadd.xlane.f32.xlu1 %v167_v62 }
 0x104   :  { %v374_v63 = vpop.xlane.xlu2 %373 }
 0x105   :  { %v396_v1 = vmax.f32 %v374_v63, 1e-20  ;;  %v853_v34 = vpop.xlane.xlu0 %150 }
 0x106   :  { %v173_v50 = vmax.f32 %v853_v34, 1e-20 }
 0x107   :  { %630 = vrcp.f32 %v396_v1 }
 0x10c   :  { %v377_v43 = vpop.xlane.xlu2 %376 }
 0x10d   :  { %v631_v53 = vpop.eup %630  ;;  %v397_v12 = vmax.f32 %v377_v43, 1e-20 }
 0x10f   :  { %v441_v2 = vpop.f32.mrf.mxu1 }
 0x110   :  { %v469_v4 = vmul.f32 %v631_v53, %v441_v2 }
 0x112   :  { %485 = vrot.lane.b32.xlu0 %v469_v4, %s665_s2 }
 0x114   :  { %v451_v5 = vpop.f32.mrf.mxu3  ;;  %v386_v6 = vpop.xlane.xlu2 %385 }
 0x115   :  { %v400_v7 = vmax.f32 %v386_v6, 1e-20  ;;  %v380_v9 = vpop.xlane.xlu0 %379 }
 0x116   :  { %v398_v10 = vmax.f32 %v380_v9, 1e-20 }
 0x117   :  { %632 = vrcp.f32 %v400_v7  ;;  %v443_v11 = vpop.f32.mrf.mxu1 }
 0x118   :  { %634 = vrcp.f32 %v398_v10 }
 0x119   :  { %636 = vrcp.f32 %v397_v12 }
 0x11c   :  { %v453_v14 = vpop.f32.mrf.mxu3  ;;  %v395_v19 = vpop.xlane.xlu2 %394 }
 0x11d   :  { %v633_v15 = vpop.eup %632  ;;  %v403_v8 = vmax.f32 %v395_v19, 1e-20  ;;  %v389_v32 = vpop.xlane.xlu0 %388 }
 0x11e   :  { %v473_v16 = vmul.f32 %v633_v15, %v451_v5  ;;  %v635_v18 = vpop.eup %634  ;;  %v401_v35 = vmax.f32 %v389_v32, 1e-20 }
 0x11f   :  { %v446_v20 = vpop.f32.mrf.mxu1  ;;  %v637_v24 = vpop.eup %636  ;;  %638 = vrcp.f32 %v403_v8 }
 0x120   :  { %v471_v21 = vmul.f32 %v635_v18, %v446_v20  ;;  %493 = vrot.lane.b32.xlu1 %v473_v16, %s665_s2  ;;  %v470_v26 = vmul.f32 %v637_v24, %v443_v11 }
 0x122   :  { %489 = vrot.lane.b32.xlu2 %v471_v21, %s665_s2 }
 0x124   :  { %v456_v22 = vpop.f32.mrf.mxu3  ;;  %v163_v45 = vpop.xlane.xlu2 %162 }
 0x125   :  { %v154_v25 = vpop.xlane.xlu1 %153  ;;  %v639_v17 = vpop.eup %638  ;;  %v177_v42 = vmax.f32 %v163_v45, 1e-20 }
 0x126   :  { %v174_v63 = vmax.f32 %v154_v25, 1e-20 }
 0x127   :  { %v448_v39 = vpop.f32.mrf.mxu1 }
 0x128   :  { %487 = vrot.lane.b32.xlu1 %v470_v26, %s665_s2 }
 0x12c   :  { %v458_v27 = vpop.f32.mrf.mxu3  ;;  %v172_v48 = vpop.xlane.xlu2 %171 }
 0x12d   :  { %v476_v29 = vmul.f32 %v639_v17, %v458_v27  ;;  %v383_v30 = vpop.xlane.xlu1 %382  ;;  %v157_v46 = vpop.xlane.xlu0 %156  ;;  %v180_v4 = vmax.f32 %v172_v48, 1e-20 }
 0x12e   :  { %v399_v31 = vmax.f32 %v383_v30, 1e-20  ;;  %v175_v47 = vmax.f32 %v157_v46, 1e-20  ;;  %v248_v56 = vpop.f32.mrf.mxu2 }
 0x130   :  { %499 = vrot.lane.b32.xlu1 %v476_v29, %s665_s2  ;;  %640 = vrcp.f32 %v399_v31  ;;  %v238_v44 = vpop.f32.mrf.mxu0 }
 0x131   :  { %642 = vrcp.f32 %v401_v35 }
 0x135   :  { %v392_v36 = vpop.xlane.xlu1 %391  ;;  %v166_v3 = vpop.xlane.xlu0 %165 }
 0x136   :  { %v402_v59 = vmax.f32 %v392_v36, 1e-20  ;;  %v641_v38 = vpop.eup %640  ;;  %v250_v61 = vpop.f32.mrf.mxu2 }
 0x137   :  { %v472_v40 = vmul.f32 %v641_v38, %v448_v39  ;;  %v643_v28 = vpop.eup %642 }
 0x138   :  { %644 = vrcp.f32 %v402_v59  ;;  %v474_v0 = vmul.f32 %v643_v28, %v453_v14  ;;  %v240_v13 = vpop.f32.mrf.mxu0 }
 0x139   :  { %491 = vrot.lane.b32.xlu0 %v472_v40, %s665_s2  ;;  %646 = vrcp.f32 %v175_v47 }
 0x13a   :  { %648 = vrcp.f32 %v173_v50 }
 0x13b   :  { %650 = vrcp.f32 %v177_v42 }
 0x13c   :  { %652 = vrcp.f32 %v174_v63 }
 0x13d   :  { %v160_v57 = vpop.xlane.xlu1 %159 }
 0x13e   :  { %v645_v49 = vpop.eup %644  ;;  %v253_v5 = vpop.f32.mrf.mxu2  ;;  %v176_v19 = vmax.f32 %v160_v57, 1e-20 }
 0x13f   :  { %v475_v41 = vmul.f32 %v645_v49, %v456_v22  ;;  %v647_v54 = vpop.eup %646  ;;  %v178_v22 = vmax.f32 %v166_v3, 1e-20 }
 0x140   :  { %v243_v52 = vpop.f32.mrf.mxu0  ;;  %v649_v33 = vpop.eup %648 }
 0x141   :  { %495 = vrot.lane.b32.xlu0 %v474_v0, %s665_s2  ;;  %497 = vrot.lane.b32.xlu2 %v475_v41, %s665_s2  ;;  %v268_v60 = vmul.f32 %v647_v54, %v243_v52  ;;  %v266_v37 = vmul.f32 %v649_v33, %v238_v44  ;;  %v651_v1 = vpop.eup %650 }
 0x142   :  { %v270_v43 = vmul.f32 %v651_v1, %v248_v56  ;;  %v653_v6 = vpop.eup %652 }
 0x143   :  { %v267_v9 = vmul.f32 %v653_v6, %v240_v13 }
 0x145   :  { %v169_v62 = vpop.xlane.xlu1 %168 }
 0x146   :  { %v179_v34 = vmax.f32 %v169_v62, 1e-20  ;;  %v255_v18 = vpop.f32.mrf.mxu2 }
 0x148   :  { %654 = vrcp.f32 %v179_v34  ;;  %v245_v24 = vpop.f32.mrf.mxu0 }
 0x149   :  { %656 = vrcp.f32 %v180_v4 }
 0x14a   :  { %658 = vrcp.f32 %v176_v19 }
 0x14b   :  { %660 = vrcp.f32 %v178_v22 }
 0x14e   :  { %v655_v7 = vpop.eup %654 }
 0x14f   :  { %v272_v12 = vmul.f32 %v655_v7, %v253_v5  ;;  %v657_v16 = vpop.eup %656 }
 0x150   :  { %v273_v20 = vmul.f32 %v657_v16, %v255_v18  ;;  %v659_v25 = vpop.eup %658 }
 0x151   :  { %v269_v26 = vmul.f32 %v659_v25, %v245_v24  ;;  %v661_v29 = vpop.eup %660 }
 0x152   :  { %v271_v30 = vmul.f32 %v661_v29, %v250_v61 }
 0x17c   :  { %v490_v55 = vpop.permute.xlu2 %489 }
 0x17d   :  { %v512_v23 = vsel %vm509_vm1, %v268_v60, %v490_v55 }
 0x17e   :  { %520 = vst.msk [vmem:[%s908_s4 + $0x10] sm:$0xff] %vm148_vm8, %v512_v23 }
 0x184   :  { %v486_v51 = vpop.permute.xlu0 %485 }
 0x185   :  { %v510_v58 = vsel %vm509_vm1, %v266_v37, %v486_v51 }
 0x186   :  { %518 = vst.msk [vmem:[%s908_s4] sm:$0xff] %vm148_vm8, %v510_v58 }
 0x192   :  { %v494_v53 = vpop.permute.xlu1 %493 }
 0x193   :  { %v514_v2 = vsel %vm509_vm1, %v270_v43, %v494_v53 }
 0x194   :  { %522 = vst.msk [vmem:[%s908_s4 + $0x20] sm:$0xff] %vm148_vm8, %v514_v2 }
 0x19a   :  { %v488_v10 = vpop.permute.xlu1 %487 }
 0x19b   :  { %v511_v11 = vsel %vm509_vm1, %v267_v9, %v488_v10  ;;  %v498_v14 = vpop.permute.xlu2 %497 }
 0x19c   :  { %519 = vst.msk [vmem:[%s908_s4 + $0x8] sm:$0xff] %vm148_vm8, %v511_v11  ;;  %v516_v15 = vsel %vm509_vm1, %v272_v12, %v498_v14 }
 0x19d   :  { %524 = vst.msk [vmem:[%s908_s4 + $0x30] sm:$0xff] %vm148_vm8, %v516_v15 }
 0x1a2   :  { %v500_v21 = vpop.permute.xlu1 %499 }
 0x1a3   :  { %v517_v8 = vsel %vm509_vm1, %v273_v20, %v500_v21 }
 0x1a4   :  { %525 = vst.msk [vmem:[%s908_s4 + $0x38] sm:$0xff] %vm148_vm8, %v517_v8 }
 0x1ab   :  { %v492_v17 = vpop.permute.xlu0 %491 }
 0x1ac   :  { %v513_v27 = vsel %vm509_vm1, %v269_v26, %v492_v17 }
 0x1ad   :  { %521 = vst.msk [vmem:[%s908_s4 + $0x18] sm:$0xff] %vm148_vm8, %v513_v27 }
 0x1b3   :  { %v496_v31 = vpop.permute.xlu0 %495 }
 0x1b4   :  { %v515_v32 = vsel %vm509_vm1, %v271_v30, %v496_v31 }
 0x1b5   :  { %523 = vst.msk [vmem:[%s908_s4 + $0x28] sm:$0xff] %vm148_vm8, %v515_v32 }

</bundles_post_ra>
